<compile_context>
chip_gen: v6e
topology: v6e:2x2x1
jax: 0.10.0
libtpu: 0.0.40
codegen_flags: <defaults>
</compile_context>

<pallas_src>
import jax
import jax.numpy as jnp
from jax.experimental import pallas as pl
from jax.experimental.pallas import tpu as pltpu
import numpy as np


def _fold_phase_weights(w_hwio):
    """Pre-sum the 3x3 kernel into per-phase 2x2 taps.

    w_hwio: (3, 3, Cin, Cout).
    Returns pw: (2, 2, 4*Cin, Cout) indexed [row_phase a, col_phase b]; the 4*Cin rows
    are ordered as taps (r, s) in ((0,0), (0,1), (1,0), (1,1)) blocks of Cin, matching
    the im2col concat order used in the kernel.
    """
    # Output row 2i+a, conv tap dy reads original row i + (a - 1 + r); which dy's
    # collapse onto which tap r (same mapping for columns with dx, b, s):
    tap_sets = {(0, 0): (0,), (0, 1): (1, 2), (1, 0): (0, 1), (1, 1): (2,)}
    phases_a = []
    for a in range(2):
        phases_b = []
        for b in range(2):
            taps = []
            for r in range(2):
                for s in range(2):
                    w_sum = jnp.zeros_like(w_hwio[0, 0])
                    for dy in tap_sets[(a, r)]:
                        for dx in tap_sets[(b, s)]:
                            w_sum = w_sum + w_hwio[dy, dx]
                    taps.append(w_sum)                          # (Cin, Cout)
            phases_b.append(jnp.concatenate(taps, axis=0))      # (4*Cin, Cout)
        phases_a.append(jnp.stack(phases_b, axis=0))            # (2, 4*Cin, Cout)
    return jnp.stack(phases_a, axis=0)                          # (2, 2, 4*Cin, Cout)


def upsample_conv_kernel(x_ref, w_ref, b_ref, o_ref):
    # x_ref: (H+2, W+2, C)  zero-padded input for one batch element (phase-invariant)
    # w_ref: (2, 4*C, C)    folded phase weights for row-phase a = program_id(1)
    # b_ref: (1, C)         conv bias
    # o_ref: (2, H, W, C)   outputs for column phases b = 0, 1
    a = pl.program_id(1)
    hp2, wp2, c = x_ref.shape
    h, w = hp2 - 2, wp2 - 2

    bias = b_ref[...].astype(jnp.float32)                       # (1, C), hoisted

    for b in range(2):                                          # column phase, static unroll
        taps = []
        for r in range(2):
            for s in range(2):
                # Original-resolution 2x2 neighborhood of this output phase.
                taps.append(x_ref[pl.ds(a + r, h), pl.ds(b + s, w), :])
        patch = jnp.concatenate(taps, axis=-1).reshape(h * w, 4 * c)
        acc = jnp.dot(patch, w_ref[b], preferred_element_type=jnp.float32) + bias
        o_ref[b] = acc.reshape(h, w, c).astype(o_ref.dtype)


def upsample_block(x_nchw, weight_oihw, bias):
    """x_nchw: (N, C, H, W); weight_oihw: (C, C, 3, 3); bias: (C,). Returns (N, C, 2H, 2W)."""
    N, C, H, W = x_nchw.shape
    x_nhwc = jnp.transpose(x_nchw, (0, 2, 3, 1))                    # (N, H, W, C)
    x_pad = jnp.pad(x_nhwc, ((0, 0), (1, 1), (1, 1), (0, 0)))       # halo in HBM, not in-kernel
    w_hwio = jnp.transpose(weight_oihw, (2, 3, 1, 0))               # (3, 3, Cin, Cout)
    pw = _fold_phase_weights(w_hwio)                                # (2, 2, 4C, C)
    b2 = bias.reshape(1, C)

    phase_out = pl.pallas_call(
        upsample_conv_kernel,
        out_shape=jax.ShapeDtypeStruct((N, 2, 2, H, W, C), x_nchw.dtype),
        grid_spec=pltpu.PrefetchScalarGridSpec(
            num_scalar_prefetch=0,
            grid=(N, 2),                                            # batch x row-phase
            in_specs=[
                pl.BlockSpec((None, H + 2, W + 2, C), lambda n, a: (n, 0, 0, 0)),
                pl.BlockSpec((None, 2, 4 * C, C), lambda n, a: (a, 0, 0, 0)),
                pl.BlockSpec((1, C), lambda n, a: (0, 0)),
            ],
            out_specs=pl.BlockSpec((None, None, 2, H, W, C),
                                   lambda n, a: (n, a, 0, 0, 0, 0)),
        ),
        compiler_params=pltpu.CompilerParams(
            dimension_semantics=("parallel", "parallel")),
    )(x_pad, pw, b2)

    # Interleave phases: out[n, 2i+a, 2j+b, c] = phase_out[n, a, b, i, j, c].
    out_nhwc = jnp.transpose(phase_out, (0, 3, 1, 4, 2, 5)).reshape(N, 2 * H, 2 * W, C)
    return jnp.transpose(out_nhwc, (0, 3, 1, 2))                    # back to NCHW


def reference_upsample_block(x_nchw, weight_oihw, bias):
    """Plain-JAX reference matching the PyTorch forward (for verification)."""
    up = jnp.repeat(jnp.repeat(x_nchw, 2, axis=2), 2, axis=3)
    out = jax.lax.conv_general_dilated(
        up, weight_oihw, window_strides=(1, 1), padding=((1, 1), (1, 1)),
        dimension_numbers=("NCHW", "OIHW", "NCHW"))
    return out + bias[None, :, None, None]


if __name__ == "__main__":
    key = jax.random.PRNGKey(0)
    kx, kw, kb = jax.random.split(key, 3)

    N, C, H, W = 2, 4, 16, 16
    x = jax.random.normal(kx, (N, C, H, W), dtype=jnp.float32)
    # Deterministic parameter init (shapes from nn.Conv2d(channels, channels, 3, 1, 1)).
    fan_in = C * 3 * 3
    weight = jax.random.normal(kw, (C, C, 3, 3), dtype=jnp.float32) / np.sqrt(fan_in)
    bias = jax.random.normal(kb, (C,), dtype=jnp.float32) * 0.1

    out = jax.jit(upsample_block)(x, weight, bias)
    out = jax.block_until_ready(out)

    ref = reference_upsample_block(x, weight, bias)
    assert out.shape == (N, C, 2 * H, 2 * W), out.shape
    np.testing.assert_allclose(np.asarray(out), np.asarray(ref), rtol=1e-5, atol=1e-5)

    print("KERNEL_OK")
</pallas_src>

<mosaic_0001>
module attributes {stable_mosaic.version = 11 : i64} {
  func.func @upsample_conv_kernel(%arg0: i32, %arg1: i32, %arg2: memref<1x18x18x4xf32, #tpu.memory_space<vmem>>, %arg3: memref<1x2x16x4xf32, #tpu.memory_space<vmem>>, %arg4: memref<1x4xf32, #tpu.memory_space<vmem>>, %arg5: memref<1x1x2x16x16x4xf32, #tpu.memory_space<vmem>>) attributes {dimension_semantics = [#tpu.dimension_semantics<parallel>, #tpu.dimension_semantics<parallel>], iteration_bounds = array<i64: 2, 2>, scalar_prefetch = 0 : i64, scratch_operands = 0 : i64, tpu.core_type = #tpu.core_type<tc>, window_params = [{transform_indices = @transform_0, window_bounds = array<i64: 1, 18, 18, 4>}, {transform_indices = @transform_1, window_bounds = array<i64: 1, 2, 16, 4>}, {pipeline_mode = #tpu.pipeline_mode<synchronous>, transform_indices = @transform_2, window_bounds = array<i64: 1, 4>}, {transform_indices = @transform_3, window_bounds = array<i64: 1, 1, 2, 16, 16, 4>}]} {
    %c0 = arith.constant 0 : index
    %c0_0 = arith.constant 0 : index
    %0 = vector.load %arg4[%c0, %c0_0] : memref<1x4xf32, #tpu.memory_space<vmem>>, vector<1x4xf32>
    %c0_i32 = arith.constant 0 : i32
    %1 = arith.addi %arg1, %c0_i32 : i32
    %c0_1 = arith.constant 0 : index
    %2 = arith.index_cast %1 : i32 to index
    %c0_2 = arith.constant 0 : index
    %c0_3 = arith.constant 0 : index
    %3 = vector.load %arg2[%c0_1, %2, %c0_2, %c0_3] : memref<1x18x18x4xf32, #tpu.memory_space<vmem>>, vector<1x16x16x4xf32>
    %4 = vector.shape_cast %3 : vector<1x16x16x4xf32> to vector<16x16x4xf32>
    %c0_i32_4 = arith.constant 0 : i32
    %5 = arith.addi %arg1, %c0_i32_4 : i32
    %c0_5 = arith.constant 0 : index
    %6 = arith.index_cast %5 : i32 to index
    %c1 = arith.constant 1 : index
    %c0_6 = arith.constant 0 : index
    %7 = vector.load %arg2[%c0_5, %6, %c1, %c0_6] : memref<1x18x18x4xf32, #tpu.memory_space<vmem>>, vector<1x16x16x4xf32>
    %8 = vector.shape_cast %7 : vector<1x16x16x4xf32> to vector<16x16x4xf32>
    %c1_i32 = arith.constant 1 : i32
    %9 = arith.addi %arg1, %c1_i32 : i32
    %c0_7 = arith.constant 0 : index
    %10 = arith.index_cast %9 : i32 to index
    %c0_8 = arith.constant 0 : index
    %c0_9 = arith.constant 0 : index
    %11 = vector.load %arg2[%c0_7, %10, %c0_8, %c0_9] : memref<1x18x18x4xf32, #tpu.memory_space<vmem>>, vector<1x16x16x4xf32>
    %12 = vector.shape_cast %11 : vector<1x16x16x4xf32> to vector<16x16x4xf32>
    %c1_i32_10 = arith.constant 1 : i32
    %13 = arith.addi %arg1, %c1_i32_10 : i32
    %c0_11 = arith.constant 0 : index
    %14 = arith.index_cast %13 : i32 to index
    %c1_12 = arith.constant 1 : index
    %c0_13 = arith.constant 0 : index
    %15 = vector.load %arg2[%c0_11, %14, %c1_12, %c0_13] : memref<1x18x18x4xf32, #tpu.memory_space<vmem>>, vector<1x16x16x4xf32>
    %16 = vector.shape_cast %15 : vector<1x16x16x4xf32> to vector<16x16x4xf32>
    %17 = tpu.concatenate %4, %8, %12, %16 in 2 : vector<16x16x4xf32>, vector<16x16x4xf32>, vector<16x16x4xf32>, vector<16x16x4xf32> -> vector<16x16x16xf32>
    %18 = vector.shape_cast %17 : vector<16x16x16xf32> to vector<256x16xf32>
    %c0_14 = arith.constant 0 : index
    %c0_15 = arith.constant 0 : index
    %c0_16 = arith.constant 0 : index
    %c0_17 = arith.constant 0 : index
    %19 = vector.load %arg3[%c0_14, %c0_15, %c0_16, %c0_17] : memref<1x2x16x4xf32, #tpu.memory_space<vmem>>, vector<1x1x16x4xf32>
    %20 = vector.shape_cast %19 : vector<1x1x16x4xf32> to vector<16x4xf32>
    %cst = arith.constant dense<0.000000e+00> : vector<256x4xf32>
    %21 = tpu.matmul %18, %20, %cst {dimension_numbers = #tpu.dot_dimension_numbers<[1], [0], [0], [1], [0, 0, 1, 1], [], []>} : vector<256x16xf32>, vector<16x4xf32>, vector<256x4xf32> -> vector<256x4xf32>
    %22 = vector.broadcast %0 : vector<1x4xf32> to vector<256x4xf32>
    %23 = arith.addf %21, %22 : vector<256x4xf32>
    %24 = vector.shape_cast %23 : vector<256x4xf32> to vector<16x16x4xf32>
    %c0_18 = arith.constant 0 : index
    %c0_19 = arith.constant 0 : index
    %c0_20 = arith.constant 0 : index
    %c0_21 = arith.constant 0 : index
    %c0_22 = arith.constant 0 : index
    %c0_23 = arith.constant 0 : index
    %25 = vector.load %arg5[%c0_18, %c0_19, %c0_20, %c0_21, %c0_22, %c0_23] : memref<1x1x2x16x16x4xf32, #tpu.memory_space<vmem>>, vector<1x1x1x16x16x4xf32>
    %26 = vector.shape_cast %25 : vector<1x1x1x16x16x4xf32> to vector<16x16x4xf32>
    %27 = vector.shape_cast %24 : vector<16x16x4xf32> to vector<1x1x1x16x16x4xf32>
    tpu.vector_store %arg5[%c0_18, %c0_19, %c0_20, %c0_21, %c0_22, %c0_23], %27 {strides = array<i32>} : memref<1x1x2x16x16x4xf32, #tpu.memory_space<vmem>>, vector<1x1x1x16x16x4xf32>,
    %c0_i32_24 = arith.constant 0 : i32
    %28 = arith.addi %arg1, %c0_i32_24 : i32
    %c0_25 = arith.constant 0 : index
    %29 = arith.index_cast %28 : i32 to index
    %c1_26 = arith.constant 1 : index
    %c0_27 = arith.constant 0 : index
    %30 = vector.load %arg2[%c0_25, %29, %c1_26, %c0_27] : memref<1x18x18x4xf32, #tpu.memory_space<vmem>>, vector<1x16x16x4xf32>
    %31 = vector.shape_cast %30 : vector<1x16x16x4xf32> to vector<16x16x4xf32>
    %c0_i32_28 = arith.constant 0 : i32
    %32 = arith.addi %arg1, %c0_i32_28 : i32
    %c0_29 = arith.constant 0 : index
    %33 = arith.index_cast %32 : i32 to index
    %c2 = arith.constant 2 : index
    %c0_30 = arith.constant 0 : index
    %34 = vector.load %arg2[%c0_29, %33, %c2, %c0_30] : memref<1x18x18x4xf32, #tpu.memory_space<vmem>>, vector<1x16x16x4xf32>
    %35 = vector.shape_cast %34 : vector<1x16x16x4xf32> to vector<16x16x4xf32>
    %c1_i32_31 = arith.constant 1 : i32
    %36 = arith.addi %arg1, %c1_i32_31 : i32
    %c0_32 = arith.constant 0 : index
    %37 = arith.index_cast %36 : i32 to index
    %c1_33 = arith.constant 1 : index
    %c0_34 = arith.constant 0 : index
    %38 = vector.load %arg2[%c0_32, %37, %c1_33, %c0_34] : memref<1x18x18x4xf32, #tpu.memory_space<vmem>>, vector<1x16x16x4xf32>
    %39 = vector.shape_cast %38 : vector<1x16x16x4xf32> to vector<16x16x4xf32>
    %c1_i32_35 = arith.constant 1 : i32
    %40 = arith.addi %arg1, %c1_i32_35 : i32
    %c0_36 = arith.constant 0 : index
    %41 = arith.index_cast %40 : i32 to index
    %c2_37 = arith.constant 2 : index
    %c0_38 = arith.constant 0 : index
    %42 = vector.load %arg2[%c0_36, %41, %c2_37, %c0_38] : memref<1x18x18x4xf32, #tpu.memory_space<vmem>>, vector<1x16x16x4xf32>
    %43 = vector.shape_cast %42 : vector<1x16x16x4xf32> to vector<16x16x4xf32>
    %44 = tpu.concatenate %31, %35, %39, %43 in 2 : vector<16x16x4xf32>, vector<16x16x4xf32>, vector<16x16x4xf32>, vector<16x16x4xf32> -> vector<16x16x16xf32>
    %45 = vector.shape_cast %44 : vector<16x16x16xf32> to vector<256x16xf32>
    %c0_39 = arith.constant 0 : index
    %c1_40 = arith.constant 1 : index
    %c0_41 = arith.constant 0 : index
    %c0_42 = arith.constant 0 : index
    %46 = vector.load %arg3[%c0_39, %c1_40, %c0_41, %c0_42] : memref<1x2x16x4xf32, #tpu.memory_space<vmem>>, vector<1x1x16x4xf32>
    %47 = vector.shape_cast %46 : vector<1x1x16x4xf32> to vector<16x4xf32>
    %cst_43 = arith.constant dense<0.000000e+00> : vector<256x4xf32>
    %48 = tpu.matmul %45, %47, %cst_43 {dimension_numbers = #tpu.dot_dimension_numbers<[1], [0], [0], [1], [0, 0, 1, 1], [], []>} : vector<256x16xf32>, vector<16x4xf32>, vector<256x4xf32> -> vector<256x4xf32>
    %49 = vector.broadcast %0 : vector<1x4xf32> to vector<256x4xf32>
    %50 = arith.addf %48, %49 : vector<256x4xf32>
    %51 = vector.shape_cast %50 : vector<256x4xf32> to vector<16x16x4xf32>
    %c0_44 = arith.constant 0 : index
    %c0_45 = arith.constant 0 : index
    %c1_46 = arith.constant 1 : index
    %c0_47 = arith.constant 0 : index
    %c0_48 = arith.constant 0 : index
    %c0_49 = arith.constant 0 : index
    %52 = vector.load %arg5[%c0_44, %c0_45, %c1_46, %c0_47, %c0_48, %c0_49] : memref<1x1x2x16x16x4xf32, #tpu.memory_space<vmem>>, vector<1x1x1x16x16x4xf32>
    %53 = vector.shape_cast %52 : vector<1x1x1x16x16x4xf32> to vector<16x16x4xf32>
    %54 = vector.shape_cast %51 : vector<16x16x4xf32> to vector<1x1x1x16x16x4xf32>
    tpu.vector_store %arg5[%c0_44, %c0_45, %c1_46, %c0_47, %c0_48, %c0_49], %54 {strides = array<i32>} : memref<1x1x2x16x16x4xf32, #tpu.memory_space<vmem>>, vector<1x1x1x16x16x4xf32>,
    return
  }
  func.func @transform_0(%arg0: i32, %arg1: i32) -> (i32, i32, i32, i32) {
    %c0_i32 = arith.constant 0 : i32
    %c0_i32_0 = arith.constant 0 : i32
    %c0_i32_1 = arith.constant 0 : i32
    %c0_i32_2 = arith.constant 0 : i32
    return %arg0, %c0_i32, %c0_i32_0, %c0_i32_1 : i32, i32, i32, i32
  }
  func.func @transform_1(%arg0: i32, %arg1: i32) -> (i32, i32, i32, i32) {
    %c0_i32 = arith.constant 0 : i32
    %c0_i32_0 = arith.constant 0 : i32
    %c0_i32_1 = arith.constant 0 : i32
    %c0_i32_2 = arith.constant 0 : i32
    return %arg1, %c0_i32, %c0_i32_0, %c0_i32_1 : i32, i32, i32, i32
  }
  func.func @transform_2(%arg0: i32, %arg1: i32) -> (i32, i32) {
    %c0_i32 = arith.constant 0 : i32
    %c0_i32_0 = arith.constant 0 : i32
    %c0_i32_1 = arith.constant 0 : i32
    return %c0_i32, %c0_i32_0 : i32, i32
  }
  func.func @transform_3(%arg0: i32, %arg1: i32) -> (i32, i32, i32, i32, i32, i32) {
    %c0_i32 = arith.constant 0 : i32
    %c0_i32_0 = arith.constant 0 : i32
    %c0_i32_1 = arith.constant 0 : i32
    %c0_i32_2 = arith.constant 0 : i32
    %c0_i32_3 = arith.constant 0 : i32
    return %arg0, %arg1, %c0_i32, %c0_i32_0, %c0_i32_1, %c0_i32_2 : i32, i32, i32, i32, i32, i32
  }
}

</mosaic_0001>

<bundles_post_ra>
// kernel: upsample_block.1
= control target key start
LH: loop header
LB: loop body
LE: loop exit
PB: predicated region body
PF: predicated region fallthrough
CT: control target
= control target key end

     0   :  { %s2780_s12 = smov 0   ;;  %s2782_s13 = smov 0   ;;  %s4005_s0 = inlined_call_operand.vmem [shape: f32[2,18,18,4], index: 0, kind: input, shape index: {}]   ;;  %s4006_s1 = inlined_call_operand.vmem [shape: f32[2,2,16,4], index: 1, kind: input, shape index: {}]   ;;  %s4007_s2 = inlined_call_operand.vmem [shape: f32[1,4], index: 2, kind: input, shape index: {}]   ;;  %s4008_s3 = inlined_call_operand.vmem [shape: f32[2,2,2,16,16,4], index: 3, kind: output, shape index: {}]  }
   0x1   :  { %s2784_s14 = smov 0   ;;  %s2786_s15 = smov 0  }
   0x2   :  { %s2788_s16 = smov 0  }
   0x3 LB: > { %s22_s17 = sadd.s32 1, %s2747_s14  ;;  %s25_s18 = sadd.s32 1, %s2751_s15  ;;  %s2755_s16 = sphi %s2788_s16, %s13_s16   ;;  %s2751_s15 = sphi %s2786_s15, %s4044_s15   ;;  %s2747_s14 = sphi %s2784_s14, %s4043_s14   ;;  %s2743_s13 = sphi %s2782_s13, %s4042_s13   ;;  %s2739_s12 = sphi %s2780_s12, %s4041_s12  }
   0x4   : > { %p23_p0 = scmp.ge.s32.totalorder %s22_s17, 2  ;;  %p2264_p1 = scmp.ge.s32.totalorder %s2755_s16, 1 }
   0x5   : > { %p161_p2 = scmp.lt.s32.totalorder %s2755_s16, 5 }
   0x6   : > { %s4046_s17 = smov (%p23_p0, %s22_s17), 0  ;;  %s4048_s18 = smov (!%p23_p0, %s25_s18), %s2751_s15 }
   0x7   : > { %p162_p3 = pnand %p2264_p1, %p161_p2  ;;  %p27_p4 = scmp.ge.s32.totalorder %s4048_s18, 2 }
   0x9   : > { %s4050_s18 = smov (%p27_p4, %s4048_s18), 0  ;;  %165 = sbr.rel (%p162_p3) target bundleno = 717 (0x2cd), region = 32 }
   0xe   : > { %p194_p5 = scmp.lt.s32.totalorder %s2743_s13, 1  ;;  %s214_s19 = smul.u32 24, %s2739_s12  ;;  %vm731_vm0 = vcmask 31744   ;;  %vm764_vm1 = vcmask 64512   ;;  %vm797_vm2 = vcmask 97280   ;;  %vm838_vm3 = vcmask 130048  }
   0xf   : > { %s2757_s25 = smov 4   ;;  %p199_p6 = scmp.lt.s32.totalorder %s2739_s12, 1 }
  0x10   : > { %s4052_s13 = smov (!%p194_p5, %s2743_s13), 1  ;;  %s2758_s30 = smov 8  }
  0x11   : > { %s2673_s20 = smul.u32 432, %s4052_s13  ;;  %s4054_s12 = smov (!%p199_p6, %s2739_s12), 1 }
  0x12   : > { %s2500_s26 = sshll.u32 %s4054_s12, 5  ;;  %s2759_s4 = smov 12  }
  0x13   : > { %s198_s23 = scalar_lea.vmem %s4005_s0, %s2673_s20  ;;  %s203_s29 = scalar_lea.vmem %s4006_s1, %s2500_s26 }
  0x14   : > { %s2819_s24 = scalar_lea.vmem %s198_s23, %s214_s19  ;;  %v831_v34 = vld [vmem:[%s203_s29 + $0x8] sm:$0xff]  ;;  %v2433_v35 = vld [vmem:[%s203_s29 + $0x18] sm:$0xff]  ;;  %v830_v37 = vld [vmem:[%s203_s29] sm:$0xff]  ;;  %s2268_s5 = sshll.u32 %s4054_s12, 6 }
  0x15   : > { %v2822_v0 = vld [vmem:[%s2819_s24 + $0x19] sm:$0xff]  ;;  %v2825_v1 = vld [vmem:[%s2819_s24 + $0x1] sm:$0xff]  ;;  %v2835_v3 = vld [vmem:[%s2819_s24 + $0x9] sm:$0xff]  ;;  %2569 = vmatprep.subr.mxu0 %v831_v34  ;;  %2621 = vmatprep.subr.mxu1 %v2433_v35  ;;  %s2269_s6 = sshll.u32 %s4052_s13, 7 }
  0x16   : > { %383 = vrot.lane.b32.xlu1 %v2822_v0, %s2757_s25  ;;  %379 = vrot.lane.b32.xlu0 %v2825_v1, %s2757_s25  ;;  %v2832_v2 = vld [vmem:[%s2819_s24 + $0x21] sm:$0xff]  ;;  %v2842_v4 = vld [vmem:[%s2819_s24 + $0x39] sm:$0xff]  ;;  %s210_s7 = sadd.s32 %s2269_s6, %s2268_s5 }
  0x17   : > { %v2845_v5 = vld [vmem:[%s2819_s24 + $0x31] sm:$0xff]  ;;  %v2855_v7 = vld [vmem:[%s2819_s24 + $0x49] sm:$0xff]  ;;  %v2865_v9 = vld [vmem:[%s2819_s24 + $0x61] sm:$0xff]  ;;  %2570 = vmatpush3.msra.mxu0 %v831_v34  ;;  %2622 = vmatpush3.msra.mxu1 %v2433_v35  ;;  %s2270_s8 = sshll.u32 %s210_s7, 3 }
  0x18   : > { %v2852_v6 = vld [vmem:[%s2819_s24 + $0x51] sm:$0xff]  ;;  %v2862_v8 = vld [vmem:[%s2819_s24 + $0x69] sm:$0xff]  ;;  %v2872_v10 = vld [vmem:[%s2819_s24 + $0x81] sm:$0xff]  ;;  %2571 = vmatprep.subr.mxu0 %v830_v37  ;;  %s3670_s13 = scalar_lea.vmem %s4008_s3, %s2270_s8 }
  0x19   : > { %v2875_v11 = vld [vmem:[%s2819_s24 + $0x79] sm:$0xff]  ;;  %v2885_v13 = vld [vmem:[%s2819_s24 + $0x91] sm:$0xff]  ;;  %v2895_v15 = vld [vmem:[%s2819_s24 + $0xa9] sm:$0xff]  ;;  %2572 = vmatpush3.msra.mxu0 %v830_v37 }
  0x1a   : > { %385 = vrot.lane.b32.xlu1 %v2832_v2, %s2757_s25  ;;  %381 = vrot.lane.b32.xlu0 %v2835_v3, %s2757_s25  ;;  %v2882_v12 = vld [vmem:[%s2819_s24 + $0x99] sm:$0xff]  ;;  %v2892_v14 = vld [vmem:[%s2819_s24 + $0xb1] sm:$0xff] }
  0x1b   : > { %v2902_v16 = vld [vmem:[%s2819_s24 + $0xc9] sm:$0xff]  ;;  %v2905_v17 = vld [vmem:[%s2819_s24 + $0xc1] sm:$0xff]  ;;  %v2915_v19 = vld [vmem:[%s2819_s24 + $0xd9] sm:$0xff] }
  0x1c   : > { %v2912_v18 = vld [vmem:[%s2819_s24 + $0xe1] sm:$0xff]  ;;  %v2922_v20 = vld [vmem:[%s2819_s24 + $0xf9] sm:$0xff]  ;;  %v2925_v21 = vld [vmem:[%s2819_s24 + $0xf1] sm:$0xff] }
  0x1d   : > { %v2932_v22 = vld [vmem:[%s2819_s24 + $0x111] sm:$0xff]  ;;  %v2935_v23 = vld [vmem:[%s2819_s24 + $0x109] sm:$0xff]  ;;  %v2943_v25 = vld [vmem:[%s2819_s24 + $0x121] sm:$0xff] }
  0x1e   : > { %389 = vrot.lane.b32.xlu1 %v2842_v4, %s2757_s25  ;;  %387 = vrot.lane.b32.xlu0 %v2845_v5, %s2757_s25  ;;  %v273_v24 = vld [vmem:[%s2819_s24 + $0x129] sm:$0xff]  ;;  %v275_v26 = vld [vmem:[%s2819_s24 + $0x141] sm:$0xff] }
  0x1f   : > { %v274_v27 = vld [vmem:[%s2819_s24 + $0x139] sm:$0xff]  ;;  %v276_v29 = vld [vmem:[%s2819_s24 + $0x151] sm:$0xff]  ;;  %v278_v31 = vld [vmem:[%s2819_s24 + $0x169] sm:$0xff] }
  0x20   : > { %v277_v28 = vld [vmem:[%s2819_s24 + $0x159] sm:$0xff]  ;;  %v279_v30 = vld [vmem:[%s2819_s24 + $0x171] sm:$0xff]  ;;  %v1224_v32 = vld [vmem:[%s2819_s24 + $0x2] sm:$0xff] }
  0x21   : > { %v2966_v33 = vld [vmem:[%s2819_s24 + $0x18] sm:$0xff]  ;;  %v1225_v36 = vld [vmem:[%s2819_s24 + $0xa] sm:$0xff]  ;;  %v2980_v39 = vld [vmem:[%s2819_s24 + $0x20] sm:$0xff] }
  0x22   : > { %393 = vrot.lane.b32.xlu1 %v2852_v6, %s2757_s25  ;;  %391 = vrot.lane.b32.xlu0 %v2855_v7, %s2757_s25  ;;  %v2432_v38 = vld [vmem:[%s203_s29 + $0x10] sm:$0xff]  ;;  %v2400_v40 = vld [vmem:[%s2819_s24 + $0x1a] sm:$0xff] }
  0x23   : > { %2623 = vmatprep.subr.mxu1 %v2432_v38  ;;  %v2401_v41 = vld [vmem:[%s2819_s24 + $0x22] sm:$0xff]  ;;  %v2995_v42 = vld [vmem:[%s2819_s24 + $0x30] sm:$0xff]  ;;  %v3004_v43 = vld [vmem:[%s2819_s24 + $0x38] sm:$0xff] }
  0x24   : > { %2624 = vmatpush3.msra.mxu1 %v2432_v38  ;;  %v2402_v44 = vld [vmem:[%s2819_s24 + $0x32] sm:$0xff]  ;;  %v2403_v45 = vld [vmem:[%s2819_s24 + $0x3a] sm:$0xff]  ;;  %v3019_v46 = vld [vmem:[%s2819_s24 + $0x48] sm:$0xff] }
  0x25   : > { %v3028_v47 = vld [vmem:[%s2819_s24 + $0x50] sm:$0xff]  ;;  %v3051_v54 = vld [vmem:[%s2819_s24 + $0x60] sm:$0xff]  ;;  %v3068_v59 = vld [vmem:[%s2819_s24 + $0x68] sm:$0xff] }
  0x26   : > { %397 = vrot.lane.b32.xlu1 %v2862_v8, %s2757_s25  ;;  %395 = vrot.lane.b32.xlu0 %v2865_v9, %s2757_s25  ;;  %v2404_v48 = vld [vmem:[%s2819_s24 + $0x4a] sm:$0xff]  ;;  %v2405_v51 = vld [vmem:[%s2819_s24 + $0x52] sm:$0xff] }
  0x27   : > { %v2406_v62 = vld [vmem:[%s2819_s24 + $0x62] sm:$0xff]  ;;  %v2408_v38 = vld [vmem:[%s2819_s24 + $0x7a] sm:$0xff] }
  0x28   : > { %v3116_v37 = vld [vmem:[%s2819_s24 + $0x80] sm:$0xff] }
  0x2a   : > { %401 = vrot.lane.b32.xlu1 %v2872_v10, %s2757_s25  ;;  %399 = vrot.lane.b32.xlu0 %v2875_v11, %s2757_s25 }
  0x2e   : > { %405 = vrot.lane.b32.xlu1 %v2882_v12, %s2757_s25  ;;  %403 = vrot.lane.b32.xlu0 %v2885_v13, %s2757_s25 }
  0x32   : > { %409 = vrot.lane.b32.xlu1 %v2892_v14, %s2757_s25  ;;  %407 = vrot.lane.b32.xlu0 %v2895_v15, %s2757_s25 }
  0x36   : > { %413 = vrot.lane.b32.xlu1 %v2902_v16, %s2757_s25  ;;  %411 = vrot.lane.b32.xlu0 %v2905_v17, %s2757_s25 }
  0x3a   : > { %417 = vrot.lane.b32.xlu1 %v2912_v18, %s2757_s25  ;;  %415 = vrot.lane.b32.xlu0 %v2915_v19, %s2757_s25 }
  0x3e   : > { %421 = vrot.lane.b32.xlu1 %v2922_v20, %s2757_s25  ;;  %419 = vrot.lane.b32.xlu0 %v2925_v21, %s2757_s25 }
  0x42   : > { %425 = vrot.lane.b32.xlu1 %v2932_v22, %s2757_s25  ;;  %423 = vrot.lane.b32.xlu0 %v2935_v23, %s2757_s25 }
  0x46   : > { %429 = vrot.lane.b32.xlu1 %v273_v24, %s2757_s25  ;;  %427 = vrot.lane.b32.xlu0 %v2943_v25, %s2757_s25 }
  0x4a   : > { %433 = vrot.lane.b32.xlu1 %v275_v26, %s2757_s25  ;;  %431 = vrot.lane.b32.xlu0 %v274_v27, %s2757_s25  ;;  %v2407_v26 = vld [vmem:[%s2819_s24 + $0x6a] sm:$0xff] }
  0x4e   : > { %437 = vrot.lane.b32.xlu1 %v277_v28, %s2757_s25  ;;  %435 = vrot.lane.b32.xlu0 %v276_v29, %s2757_s25 }
  0x52   : > { %441 = vrot.lane.b32.xlu1 %v279_v30, %s2757_s25  ;;  %439 = vrot.lane.b32.xlu0 %v278_v31, %s2757_s25  ;;  %v3099_v31 = vld [vmem:[%s2819_s24 + $0x78] sm:$0xff] }
  0x56   : > { %1352 = vrot.lane.b32.xlu1 %v1224_v32, %s2757_s25  ;;  %507 = vrot.lane.b32.xlu0 %v2966_v33, %s2758_s30 }
  0x5a   : > { %1480 = vrot.lane.b32.xlu1 %v2822_v0, %s2758_s30  ;;  %1354 = vrot.lane.b32.xlu0 %v1225_v36, %s2757_s25 }
  0x5e   : > { %635 = vrot.lane.b32.xlu1 %v2822_v0, %s2759_s4  ;;  %509 = vrot.lane.b32.xlu0 %v2980_v39, %s2758_s30 }
  0x62   : > { %1608 = vrot.lane.b32.xlu1 %v2400_v40, %s2759_s4  ;;  %1482 = vrot.lane.b32.xlu0 %v2832_v2, %s2758_s30 }
  0x66   : > { %1610 = vrot.lane.b32.xlu1 %v2401_v41, %s2759_s4  ;;  %637 = vrot.lane.b32.xlu0 %v2832_v2, %s2759_s4 }
  0x6a   : > { %511 = vrot.lane.b32.xlu1 %v2995_v42, %s2758_s30  ;;  %1356 = vrot.lane.b32.xlu0 %v2400_v40, %s2757_s25 }
  0x6e   : > { %1484 = vrot.lane.b32.xlu1 %v2845_v5, %s2758_s30  ;;  %1358 = vrot.lane.b32.xlu0 %v2401_v41, %s2757_s25 }
  0x72   : > { %639 = vrot.lane.b32.xlu1 %v2845_v5, %s2759_s4  ;;  %513 = vrot.lane.b32.xlu0 %v3004_v43, %s2758_s30 }
  0x76   : > { %1612 = vrot.lane.b32.xlu1 %v2402_v44, %s2759_s4  ;;  %1486 = vrot.lane.b32.xlu0 %v2842_v4, %s2758_s30 }
  0x7a   : > { %1614 = vrot.lane.b32.xlu1 %v2403_v45, %s2759_s4  ;;  %641 = vrot.lane.b32.xlu0 %v2842_v4, %s2759_s4 }
  0x7e   : > { %515 = vrot.lane.b32.xlu1 %v3019_v46, %s2758_s30  ;;  %1360 = vrot.lane.b32.xlu0 %v2402_v44, %s2757_s25  ;;  %v2409_v44 = vld [vmem:[%s2819_s24 + $0x82] sm:$0xff] }
  0x82   : > { %1488 = vrot.lane.b32.xlu1 %v2855_v7, %s2758_s30  ;;  %1362 = vrot.lane.b32.xlu0 %v2403_v45, %s2757_s25 }
  0x86   : > { %643 = vrot.lane.b32.xlu1 %v2855_v7, %s2759_s4  ;;  %517 = vrot.lane.b32.xlu0 %v3028_v47, %s2758_s30 }
  0x88   : > { %v3035_v49 = vpop.permute.xlu1 %383  ;;  %v3037_v50 = vpop.permute.xlu0 %379 }
  0x8a   : > { %1616 = vrot.lane.b32.xlu1 %v2404_v48, %s2759_s4  ;;  %1490 = vrot.lane.b32.xlu0 %v2852_v6, %s2758_s30 }
  0x8c   : > { %v3043_v52 = vpop.permute.xlu1 %385  ;;  %v3045_v53 = vpop.permute.xlu0 %381 }
  0x8e   : > { %1618 = vrot.lane.b32.xlu1 %v2405_v51, %s2759_s4  ;;  %645 = vrot.lane.b32.xlu0 %v2852_v6, %s2759_s4 }
  0x90   : > { %v3053_v55 = vpop.permute.xlu1 %389  ;;  %v3055_v56 = vpop.permute.xlu0 %387 }
  0x92   : > { %519 = vrot.lane.b32.xlu1 %v3051_v54, %s2758_s30  ;;  %1364 = vrot.lane.b32.xlu0 %v2404_v48, %s2757_s25 }
  0x94   : > { %v3060_v57 = vpop.permute.xlu1 %393  ;;  %v3062_v58 = vpop.permute.xlu0 %391 }
  0x96   : > { %1492 = vrot.lane.b32.xlu1 %v2865_v9, %s2758_s30  ;;  %1366 = vrot.lane.b32.xlu0 %v2405_v51, %s2757_s25 }
  0x98   : > { %v3070_v60 = vpop.permute.xlu1 %397  ;;  %v3072_v61 = vpop.permute.xlu0 %395 }
  0x9a   : > { %647 = vrot.lane.b32.xlu1 %v2865_v9, %s2759_s4  ;;  %521 = vrot.lane.b32.xlu0 %v3068_v59, %s2758_s30 }
  0x9c   : > { %v3079_v63 = vpop.permute.xlu1 %401  ;;  %v3081_v24 = vpop.permute.xlu0 %399 }
  0x9e   : > { %1620 = vrot.lane.b32.xlu1 %v2406_v62, %s2759_s4  ;;  %1494 = vrot.lane.b32.xlu0 %v2862_v8, %s2758_s30 }
  0xa0   : > { %v3087_v27 = vpop.permute.xlu1 %405  ;;  %v3089_v28 = vpop.permute.xlu0 %403 }
  0xa2   : > { %1622 = vrot.lane.b32.xlu1 %v2407_v26, %s2759_s4  ;;  %649 = vrot.lane.b32.xlu0 %v2862_v8, %s2759_s4 }
  0xa4   : > { %v3094_v29 = vpop.permute.xlu1 %409  ;;  %v3096_v30 = vpop.permute.xlu0 %407 }
  0xa6   : > { %523 = vrot.lane.b32.xlu1 %v3099_v31, %s2758_s30  ;;  %1368 = vrot.lane.b32.xlu0 %v2406_v62, %s2757_s25  ;;  %v3143_v62 = vld [vmem:[%s2819_s24 + $0x90] sm:$0xff] }
  0xa8   : > { %v3104_v32 = vpop.permute.xlu1 %413  ;;  %v3106_v34 = vpop.permute.xlu0 %411 }
  0xa9   : > { %4009 = vst [vmem:[#allocation2_spill] sm:$0xff] %v3104_v32  ;;  %4010 = vst [vmem:[#allocation3_spill] sm:$0xff] %v3106_v34  ;;  %v217_v32 = vld [vmem:[%s2819_s24 + $0x8] sm:$0xff]  ;;  %v3199_v34 = vld [vmem:[%s2819_s24 + $0xb0] sm:$0xff] }
  0xaa   : > { %1496 = vrot.lane.b32.xlu1 %v2875_v11, %s2758_s30  ;;  %1370 = vrot.lane.b32.xlu0 %v2407_v26, %s2757_s25 }
  0xac   : > { %v3111_v35 = vpop.permute.xlu1 %417  ;;  %v3113_v36 = vpop.permute.xlu0 %415 }
  0xad   : > { %4011 = vst [vmem:[#allocation4_spill] sm:$0xff] %v3111_v35  ;;  %4012 = vst [vmem:[#allocation5_spill] sm:$0xff] %v3113_v36 }
  0xae   : > { %651 = vrot.lane.b32.xlu1 %v2875_v11, %s2759_s4  ;;  %525 = vrot.lane.b32.xlu0 %v3116_v37, %s2758_s30 }
  0xb0   : > { %v3123_v40 = vpop.permute.xlu1 %421  ;;  %v3125_v41 = vpop.permute.xlu0 %419 }
  0xb1   : > { %4013 = vst [vmem:[#allocation6_spill] sm:$0xff] %v3123_v40  ;;  %4014 = vst [vmem:[#allocation7_spill] sm:$0xff] %v3125_v41 }
  0xb2   : > { %1624 = vrot.lane.b32.xlu1 %v2408_v38, %s2759_s4  ;;  %1498 = vrot.lane.b32.xlu0 %v2872_v10, %s2758_s30 }
  0xb4   : > { %v3131_v45 = vpop.permute.xlu1 %425  ;;  %v3133_v48 = vpop.permute.xlu0 %423 }
  0xb5   : > { %4015 = vst [vmem:[#allocation8_spill] sm:$0xff] %v3131_v45  ;;  %4016 = vst [vmem:[#allocation9_spill] sm:$0xff] %v3133_v48 }
  0xb6   : > { %1626 = vrot.lane.b32.xlu1 %v2409_v44, %s2759_s4  ;;  %653 = vrot.lane.b32.xlu0 %v2872_v10, %s2759_s4 }
  0xb8   : > { %v3138_v11 = vpop.permute.xlu1 %429  ;;  %v3140_v51 = vpop.permute.xlu0 %427 }
  0xb9   : > { %4017 = vst [vmem:[#allocation10_spill] sm:$0xff] %v3138_v11  ;;  %4018 = vst [vmem:[#allocation11_spill] sm:$0xff] %v3140_v51  ;;  %v3160_v51 = vld [vmem:[%s2819_s24 + $0x98] sm:$0xff] }
  0xba   : > { %527 = vrot.lane.b32.xlu1 %v3143_v62, %s2758_s30  ;;  %1372 = vrot.lane.b32.xlu0 %v2408_v38, %s2757_s25  ;;  %v2410_v38 = vld [vmem:[%s2819_s24 + $0x92] sm:$0xff] }
  0xbc   : > { %v3148_v26 = vpop.permute.xlu1 %433  ;;  %v3150_v45 = vpop.permute.xlu0 %431 }
  0xbd   : > { %4019 = vst [vmem:[#allocation12_spill] sm:$0xff] %v3148_v26  ;;  %4020 = vst [vmem:[#allocation13_spill] sm:$0xff] %v3150_v45 }
  0xbe   : > { %1500 = vrot.lane.b32.xlu1 %v2885_v13, %s2758_s30  ;;  %1374 = vrot.lane.b32.xlu0 %v2409_v44, %s2757_s25  ;;  %v2411_v44 = vld [vmem:[%s2819_s24 + $0x9a] sm:$0xff] }
  0xc0   : > { %v3155_v10 = vpop.permute.xlu1 %437  ;;  %v3157_v11 = vpop.permute.xlu0 %435 }
  0xc1   : > { %4021 = vst [vmem:[#allocation14_spill] sm:$0xff] %v3155_v10  ;;  %4022 = vst [vmem:[#allocation15_spill] sm:$0xff] %v3157_v11 }
  0xc2   : > { %655 = vrot.lane.b32.xlu1 %v2885_v13, %s2759_s4  ;;  %529 = vrot.lane.b32.xlu0 %v3160_v51, %s2758_s30  ;;  %v216_v13 = vld [vmem:[%s2819_s24] sm:$0xff] }
  0xc4   : > { %v3167_v26 = vpop.permute.xlu1 %441  ;;  %v3169_v45 = vpop.permute.xlu0 %439 }
  0xc5   : > { %4023 = vst [vmem:[#allocation16_spill] sm:$0xff] %v3167_v26  ;;  %4024 = vst [vmem:[#allocation17_spill] sm:$0xff] %v3169_v45  ;;  %v3180_v26 = vld [vmem:[%s2819_s24 + $0xa8] sm:$0xff]  ;;  %v732_v45 = vsel %vm731_vm0, %v216_v13, %v3037_v50 }
  0xc6   : > { %1628 = vrot.lane.b32.xlu1 %v2410_v38, %s2759_s4  ;;  %1502 = vrot.lane.b32.xlu0 %v2882_v12, %s2758_s30 }
  0xc8   : > { %v1353_v10 = vpop.permute.xlu1 %1352  ;;  %v508_v11 = vpop.permute.xlu0 %507 }
  0xca   : > { %1630 = vrot.lane.b32.xlu1 %v2411_v44, %s2759_s4  ;;  %657 = vrot.lane.b32.xlu0 %v2882_v12, %s2759_s4  ;;  %v765_v12 = vsel %vm764_vm1, %v732_v45, %v508_v11 }
  0xcc   : > { %v1481_v48 = vpop.permute.xlu1 %1480  ;;  %v1355_v40 = vpop.permute.xlu0 %1354 }
  0xce   : > { %531 = vrot.lane.b32.xlu1 %v3180_v26, %s2758_s30  ;;  %1376 = vrot.lane.b32.xlu0 %v2410_v38, %s2757_s25  ;;  %v1704_v38 = vsel %vm731_vm0, %v2825_v1, %v1353_v10  ;;  %v733_v1 = vsel %vm731_vm0, %v217_v32, %v3045_v53 }
  0xcf   : > { %v1736_v50 = vsel %vm764_vm1, %v1704_v38, %v1481_v48 }
  0xd0   : > { %v636_v41 = vpop.permute.xlu1 %635  ;;  %v510_v35 = vpop.permute.xlu0 %509 }
  0xd1   : > { %v798_v36 = vsel %vm797_vm2, %v765_v12, %v636_v41  ;;  %v2412_v41 = vld [vmem:[%s2819_s24 + $0xaa] sm:$0xff]  ;;  %v766_v48 = vsel %vm764_vm1, %v733_v1, %v510_v35 }
  0xd2   : > { %1504 = vrot.lane.b32.xlu1 %v2895_v15, %s2758_s30  ;;  %1378 = vrot.lane.b32.xlu0 %v2411_v44, %s2757_s25 }
  0xd3   : > { %2573 = vmatprep.mubr.msk.f32.mxu0 %vm838_vm3, %v798_v36  ;;  %v1705_v36 = vsel %vm731_vm0, %v2835_v3, %v1355_v40  ;;  %v2413_v3 = vld [vmem:[%s2819_s24 + $0xb2] sm:$0xff] }
  0xd4   : > { %v1609_v45 = vpop.permute.xlu1 %1608  ;;  %v1483_v11 = vpop.permute.xlu0 %1482 }
  0xd5   : > { %v1768_v13 = vsel %vm797_vm2, %v1736_v50, %v1609_v45  ;;  %v1737_v10 = vsel %vm764_vm1, %v1705_v36, %v1483_v11  ;;  %v3225_v50 = vld [vmem:[%s2819_s24 + $0xc0] sm:$0xff]  ;;  %v734_v45 = vsel %vm731_vm0, %v2966_v33, %v3035_v49 }
  0xd6   : > { %659 = vrot.lane.b32.xlu1 %v2895_v15, %s2759_s4  ;;  %2625 = vmatprep.mubr.msk.f32.mxu1 %vm838_vm3, %v1768_v13 }
  0xd7   : > { %533 = vrot.lane.b32.xlu0 %v3199_v34, %s2758_s30 }
  0xd8   : > { %v1611_v44 = vpop.permute.xlu1 %1610  ;;  %v638_v15 = vpop.permute.xlu0 %637 }
  0xd9   : > { %v1769_v12 = vsel %vm797_vm2, %v1737_v10, %v1611_v44  ;;  %v799_v38 = vsel %vm797_vm2, %v766_v48, %v638_v15  ;;  %v3244_v10 = vld [vmem:[%s2819_s24 + $0xc8] sm:$0xff] }
  0xda   : > { %1632 = vrot.lane.b32.xlu1 %v2412_v41, %s2759_s4  ;;  %2574 = vmatmul.mubr.msk.f32.vlgmr.msra.gmra.mxu0 %vm838_vm3, %v799_v38  ;;  %v2414_v15 = vld [vmem:[%s2819_s24 + $0xc2] sm:$0xff] }
  0xdb   : > { %1506 = vrot.lane.b32.xlu0 %v2892_v14, %s2758_s30  ;;  %2626 = vmatmul.mubr.msk.f32.vlgmr.msra.gmra.mxu1 %vm838_vm3, %v1769_v12 }
  0xdc   : > { %v512_v53 = vpop.permute.xlu1 %511  ;;  %v1357_v32 = vpop.permute.xlu0 %1356 }
  0xdd   : > { %v767_v11 = vsel %vm764_vm1, %v734_v45, %v512_v53  ;;  %v1706_v36 = vsel %vm731_vm0, %v2822_v0, %v1357_v32  ;;  %v735_v0 = vsel %vm731_vm0, %v2980_v39, %v3043_v52  ;;  %v3271_v45 = vld [vmem:[%s2819_s24 + $0xd8] sm:$0xff] }
  0xde   : > { %1634 = vrot.lane.b32.xlu1 %v2413_v3, %s2759_s4 }
  0xdf   : > { %661 = vrot.lane.b32.xlu0 %v2892_v14, %s2759_s4 }
  0xe0   : > { %v1485_v35 = vpop.permute.xlu1 %1484  ;;  %v1359_v40 = vpop.permute.xlu0 %1358 }
  0xe1   : > { %v1738_v33 = vsel %vm764_vm1, %v1706_v36, %v1485_v35  ;;  %v1707_v44 = vsel %vm731_vm0, %v2832_v2, %v1359_v40  ;;  %v2415_v2 = vld [vmem:[%s2819_s24 + $0xca] sm:$0xff] }
  0xe2   : > { %535 = vrot.lane.b32.xlu1 %v3225_v50, %s2758_s30 }
  0xe3   : > { %1380 = vrot.lane.b32.xlu0 %v2412_v41, %s2757_s25 }
  0xe4   : > { %v640_v13 = vpop.permute.xlu1 %639  ;;  %v514_v1 = vpop.permute.xlu0 %513 }
  0xe5   : > { %v800_v14 = vsel %vm797_vm2, %v767_v11, %v640_v13  ;;  %v768_v12 = vsel %vm764_vm1, %v735_v0, %v514_v1  ;;  %v736_v11 = vsel %vm731_vm0, %v2995_v42, %v3055_v56  ;;  %v2416_v0 = vld [vmem:[%s2819_s24 + $0xda] sm:$0xff] }
  0xe6   : > { %1508 = vrot.lane.b32.xlu1 %v2905_v17, %s2758_s30  ;;  %2576 = vmatprep.mubr.msk.f32.mxu0 %vm838_vm3, %v800_v14 }
  0xe7   : > { %1382 = vrot.lane.b32.xlu0 %v2413_v3, %s2757_s25 }
  0xe8   : > { %v1613_v49 = vpop.permute.xlu1 %1612  ;;  %v1487_v41 = vpop.permute.xlu0 %1486 }
  0xe9   : > { %v1770_v48 = vsel %vm797_vm2, %v1738_v33, %v1613_v49  ;;  %v1739_v38 = vsel %vm764_vm1, %v1707_v44, %v1487_v41  ;;  %v3290_v41 = vld [vmem:[%s2819_s24 + $0xe0] sm:$0xff] }
  0xea   : > { %663 = vrot.lane.b32.xlu1 %v2905_v17, %s2759_s4  ;;  %2628 = vmatprep.mubr.msk.f32.mxu1 %vm838_vm3, %v1770_v48 }
  0xeb   : > { %537 = vrot.lane.b32.xlu0 %v3244_v10, %s2758_s30 }
  0xec   : > { %v1615_v17 = vpop.permute.xlu1 %1614  ;;  %v642_v3 = vpop.permute.xlu0 %641 }
  0xed   : > { %v1771_v53 = vsel %vm797_vm2, %v1739_v38, %v1615_v17  ;;  %v801_v32 = vsel %vm797_vm2, %v768_v12, %v642_v3 }
  0xee   : > { %1636 = vrot.lane.b32.xlu1 %v2414_v15, %s2759_s4  ;;  %2577 = vmatmul.mubr.msk.f32.gmra.mxu0 %vm838_vm3, %v801_v32  ;;  %v3317_v32 = vld [vmem:[%s2819_s24 + $0xf0] sm:$0xff] }
  0xef   : > { %1510 = vrot.lane.b32.xlu0 %v2902_v16, %s2758_s30  ;;  %2629 = vmatmul.mubr.msk.f32.gmra.mxu1 %vm838_vm3, %v1771_v53 }
  0xf0   : > { %v516_v39 = vpop.permute.xlu1 %515  ;;  %v1361_v52 = vpop.permute.xlu0 %1360 }
  0xf1   : > { %v769_v13 = vsel %vm764_vm1, %v736_v11, %v516_v39  ;;  %v1708_v36 = vsel %vm731_vm0, %v2845_v5, %v1361_v52  ;;  %v737_v5 = vsel %vm731_vm0, %v3004_v43, %v3053_v55 }
  0xf2   : > { %1638 = vrot.lane.b32.xlu1 %v2415_v2, %s2759_s4 }
  0xf3   : > { %665 = vrot.lane.b32.xlu0 %v2902_v16, %s2759_s4 }
  0xf4   : > { %v1489_v35 = vpop.permute.xlu1 %1488  ;;  %v1363_v40 = vpop.permute.xlu0 %1362 }
  0xf5   : > { %v1740_v42 = vsel %vm764_vm1, %v1708_v36, %v1489_v35  ;;  %v1709_v48 = vsel %vm731_vm0, %v2842_v4, %v1363_v40  ;;  %v2417_v4 = vld [vmem:[%s2819_s24 + $0xe2] sm:$0xff] }
  0xf6   : > { %539 = vrot.lane.b32.xlu1 %v3271_v45, %s2758_s30 }
  0xf7   : > { %1384 = vrot.lane.b32.xlu0 %v2414_v15, %s2757_s25 }
  0xf8   : > { %v644_v1 = vpop.permute.xlu1 %643  ;;  %v518_v14 = vpop.permute.xlu0 %517 }
  0xf9   : > { %v802_v16 = vsel %vm797_vm2, %v769_v13, %v644_v1  ;;  %v770_v44 = vsel %vm764_vm1, %v737_v5, %v518_v14  ;;  %v3336_v1 = vld [vmem:[%s2819_s24 + $0xf8] sm:$0xff] }
  0xfa   : > { %1512 = vrot.lane.b32.xlu1 %v2915_v19, %s2758_s30  ;;  %2579 = vmatprep.mubr.msk.f32.mxu0 %vm838_vm3, %v802_v16  ;;  %v2418_v16 = vld [vmem:[%s2819_s24 + $0xf2] sm:$0xff] }
  0xfb   : > { %1386 = vrot.lane.b32.xlu0 %v2415_v2, %s2757_s25  ;;  %v738_v2 = vsel %vm731_vm0, %v3019_v46, %v3062_v58 }
  0xfc   : > { %v1617_v56 = vpop.permute.xlu1 %1616  ;;  %v1491_v33 = vpop.permute.xlu0 %1490 }
  0xfd   : > { %v1772_v49 = vsel %vm797_vm2, %v1740_v42, %v1617_v56  ;;  %v1741_v15 = vsel %vm764_vm1, %v1709_v48, %v1491_v33 }
  0xfe   : > { %667 = vrot.lane.b32.xlu1 %v2915_v19, %s2759_s4  ;;  %2631 = vmatprep.mubr.msk.f32.mxu1 %vm838_vm3, %v1772_v49 }
  0xff   : > { %541 = vrot.lane.b32.xlu0 %v3290_v41, %s2758_s30 }
 0x100   : > { %v1619_v19 = vpop.permute.xlu1 %1618  ;;  %v646_v12 = vpop.permute.xlu0 %645 }
 0x101   : > { %v1773_v38 = vsel %vm797_vm2, %v1741_v15, %v1619_v19  ;;  %v803_v17 = vsel %vm797_vm2, %v770_v44, %v646_v12  ;;  %v740_v44 = vsel %vm731_vm0, %v3051_v54, %v3072_v61 }
 0x102   : > { %1640 = vrot.lane.b32.xlu1 %v2416_v0, %s2759_s4  ;;  %2580 = vmatmul.mubr.msk.f32.gmra.mxu0 %vm838_vm3, %v803_v17 }
 0x103   : > { %1514 = vrot.lane.b32.xlu0 %v2912_v18, %s2758_s30  ;;  %2632 = vmatmul.mubr.msk.f32.gmra.mxu1 %vm838_vm3, %v1773_v38 }
 0x104   : > { %v520_v43 = vpop.permute.xlu1 %519  ;;  %v1365_v55 = vpop.permute.xlu0 %1364 }
 0x105   : > { %v771_v39 = vsel %vm764_vm1, %v738_v2, %v520_v43  ;;  %v1710_v40 = vsel %vm731_vm0, %v2855_v7, %v1365_v55  ;;  %v739_v7 = vsel %vm731_vm0, %v3028_v47, %v3060_v57  ;;  %v3382_v43 = vld [vmem:[%s2819_s24 + $0x110] sm:$0xff] }
 0x106   : > { %1642 = vrot.lane.b32.xlu1 %v2417_v4, %s2759_s4 }
 0x107   : > { %669 = vrot.lane.b32.xlu0 %v2912_v18, %s2759_s4 }
 0x108   : > { %v1493_v3 = vpop.permute.xlu1 %1492  ;;  %v1367_v53 = vpop.permute.xlu0 %1366 }
 0x109   : > { %v1742_v46 = vsel %vm764_vm1, %v1710_v40, %v1493_v3  ;;  %v1711_v14 = vsel %vm731_vm0, %v2852_v6, %v1367_v53  ;;  %v2419_v6 = vld [vmem:[%s2819_s24 + $0xfa] sm:$0xff]  ;;  %v2420_v3 = vld [vmem:[%s2819_s24 + $0x10a] sm:$0xff] }
 0x10a   : > { %543 = vrot.lane.b32.xlu1 %v3317_v32, %s2758_s30 }
 0x10b   : > { %1388 = vrot.lane.b32.xlu0 %v2416_v0, %s2757_s25  ;;  %v3363_v0 = vld [vmem:[%s2819_s24 + $0x108] sm:$0xff] }
 0x10c   : > { %v648_v52 = vpop.permute.xlu1 %647  ;;  %v522_v35 = vpop.permute.xlu0 %521 }
 0x10d   : > { %v804_v18 = vsel %vm797_vm2, %v771_v39, %v648_v52  ;;  %v772_v36 = vsel %vm764_vm1, %v739_v7, %v522_v35 }
 0x10e   : > { %1516 = vrot.lane.b32.xlu1 %v2925_v21, %s2758_s30  ;;  %2582 = vmatprep.mubr.msk.f32.mxu0 %vm838_vm3, %v804_v18 }
 0x10f   : > { %1390 = vrot.lane.b32.xlu0 %v2417_v4, %s2757_s25 }
 0x110   : > { %v1621_v58 = vpop.permute.xlu1 %1620  ;;  %v1495_v11 = vpop.permute.xlu0 %1494 }
 0x111   : > { %v1774_v13 = vsel %vm797_vm2, %v1742_v46, %v1621_v58  ;;  %v1743_v42 = vsel %vm764_vm1, %v1711_v14, %v1495_v11  ;;  %v3409_v46 = vld [vmem:[%s2819_s24 + $0x120] sm:$0xff]  ;;  %v742_v58 = vsel %vm731_vm0, %v3099_v31, %v3081_v24 }
 0x112   : > { %671 = vrot.lane.b32.xlu1 %v2925_v21, %s2759_s4  ;;  %2634 = vmatprep.mubr.msk.f32.mxu1 %vm838_vm3, %v1774_v13  ;;  %v1202_v13 = vld [vmem:[%s2819_s24 + $0x79] sm:$0xff]  ;;  %v3426_v24 = vld [vmem:[%s2819_s24 + $0x121] sm:$0xff] }
 0x113   : > { %545 = vrot.lane.b32.xlu0 %v3336_v1, %s2758_s30 }
 0x114   : > { %v1623_v21 = vpop.permute.xlu1 %1622  ;;  %v650_v56 = vpop.permute.xlu0 %649 }
 0x115   : > { %v1775_v33 = vsel %vm797_vm2, %v1743_v42, %v1623_v21  ;;  %v805_v49 = vsel %vm797_vm2, %v772_v36, %v650_v56  ;;  %v1203_v36 = vld [vmem:[%s2819_s24 + $0x81] sm:$0xff] }
 0x116   : > { %1644 = vrot.lane.b32.xlu1 %v2418_v16, %s2759_s4  ;;  %2583 = vmatmul.mubr.msk.f32.gmra.mxu0 %vm838_vm3, %v805_v49 }
 0x117   : > { %1518 = vrot.lane.b32.xlu0 %v2922_v20, %s2758_s30  ;;  %2635 = vmatmul.mubr.msk.f32.gmra.mxu1 %vm838_vm3, %v1775_v33  ;;  %v3432_v33 = vld [vmem:[%s2819_s24 + $0x128] sm:$0xff] }
 0x118   : > { %v524_v47 = vpop.permute.xlu1 %523  ;;  %v1369_v57 = vpop.permute.xlu0 %1368 }
 0x119   : > { %v773_v15 = vsel %vm764_vm1, %v740_v44, %v524_v47  ;;  %v1712_v38 = vsel %vm731_vm0, %v2865_v9, %v1369_v57  ;;  %v741_v9 = vsel %vm731_vm0, %v3068_v59, %v3070_v60  ;;  %v3447_v44 = vld [vmem:[%s2819_s24 + $0x129] sm:$0xff] }
 0x11a   : > { %1646 = vrot.lane.b32.xlu1 %v2419_v6, %s2759_s4 }
 0x11b   : > { %673 = vrot.lane.b32.xlu0 %v2922_v20, %s2759_s4 }
 0x11c   : > { %v1497_v5 = vpop.permute.xlu1 %1496  ;;  %v1371_v48 = vpop.permute.xlu0 %1370 }
 0x11d   : > { %v1744_v54 = vsel %vm764_vm1, %v1712_v38, %v1497_v5  ;;  %v1713_v55 = vsel %vm731_vm0, %v2862_v8, %v1371_v48  ;;  %v2421_v8 = vld [vmem:[%s2819_s24 + $0x112] sm:$0xff] }
 0x11e   : > { %547 = vrot.lane.b32.xlu1 %v3363_v0, %s2758_s30 }
 0x11f   : > { %1392 = vrot.lane.b32.xlu0 %v2418_v16, %s2757_s25 }
 0x120   : > { %v652_v19 = vpop.permute.xlu1 %651  ;;  %v526_v12 = vpop.permute.xlu0 %525 }
 0x121   : > { %v806_v20 = vsel %vm797_vm2, %v773_v15, %v652_v19  ;;  %v774_v53 = vsel %vm764_vm1, %v741_v9, %v526_v12  ;;  %v1204_v9 = vld [vmem:[%s2819_s24 + $0x91] sm:$0xff] }
 0x122   : > { %1520 = vrot.lane.b32.xlu1 %v2935_v23, %s2758_s30  ;;  %2585 = vmatprep.mubr.msk.f32.mxu0 %vm838_vm3, %v806_v20 }
 0x123   : > { %1394 = vrot.lane.b32.xlu0 %v2419_v6, %s2757_s25  ;;  %v2422_v6 = vld [vmem:[%s2819_s24 + $0x122] sm:$0xff] }
 0x124   : > { %v1625_v61 = vpop.permute.xlu1 %1624  ;;  %v1499_v17 = vpop.permute.xlu0 %1498 }
 0x125   : > { %v1776_v4 = vsel %vm797_vm2, %v1744_v54, %v1625_v61  ;;  %v1745_v2 = vsel %vm764_vm1, %v1713_v55, %v1499_v17  ;;  %v3461_v54 = vld [vmem:[%s2819_s24 + $0x138] sm:$0xff]  ;;  %v744_v61 = vsel %vm731_vm0, %v3143_v62, %v3089_v28 }
 0x126   : > { %675 = vrot.lane.b32.xlu1 %v2935_v23, %s2759_s4  ;;  %2637 = vmatprep.mubr.msk.f32.mxu1 %vm838_vm3, %v1776_v4  ;;  %v3470_v17 = vld [vmem:[%s2819_s24 + $0x139] sm:$0xff] }
 0x127   : > { %549 = vrot.lane.b32.xlu0 %v3382_v43, %s2758_s30 }
 0x128   : > { %v1627_v23 = vpop.permute.xlu1 %1626  ;;  %v654_v39 = vpop.permute.xlu0 %653 }
 0x129   : > { %v1777_v52 = vsel %vm797_vm2, %v1745_v2, %v1627_v23  ;;  %v807_v35 = vsel %vm797_vm2, %v774_v53, %v654_v39  ;;  %v1205_v2 = vld [vmem:[%s2819_s24 + $0x99] sm:$0xff] }
 0x12a   : > { %1648 = vrot.lane.b32.xlu1 %v2420_v3, %s2759_s4  ;;  %2586 = vmatmul.mubr.msk.f32.gmra.mxu0 %vm838_vm3, %v807_v35  ;;  %v3484_v35 = vld [vmem:[%s2819_s24 + $0x140] sm:$0xff] }
 0x12b   : > { %1522 = vrot.lane.b32.xlu0 %v2932_v22, %s2758_s30  ;;  %2638 = vmatmul.mubr.msk.f32.gmra.mxu1 %vm838_vm3, %v1777_v52 }
 0x12c   : > { %v528_v59 = vpop.permute.xlu1 %527  ;;  %v1373_v60 = vpop.permute.xlu0 %1372 }
 0x12d   : > { %v775_v11 = vsel %vm764_vm1, %v742_v58, %v528_v59  ;;  %v1714_v16 = vsel %vm731_vm0, %v1202_v13, %v1373_v60  ;;  %v2424_v59 = vld [vmem:[%s2819_s24 + $0x13a] sm:$0xff]  ;;  %v745_v60 = vsel %vm731_vm0, %v3160_v51, %v3087_v27  ;;  %v2425_v27 = vld [vmem:[%s2819_s24 + $0x142] sm:$0xff] }
 0x12e   : > { %1650 = vrot.lane.b32.xlu1 %v2421_v8, %s2759_s4  ;;  %v3498_v58 = vld [vmem:[%s2819_s24 + $0x141] sm:$0xff] }
 0x12f   : > { %677 = vrot.lane.b32.xlu0 %v2932_v22, %s2759_s4 }
 0x130   : > { %v1501_v18 = vpop.permute.xlu1 %1500  ;;  %v1375_v40 = vpop.permute.xlu0 %1374 }
 0x131   : > { %v1746_v31 = vsel %vm764_vm1, %v1714_v16, %v1501_v18  ;;  %v1715_v49 = vsel %vm731_vm0, %v1203_v36, %v1375_v40 }
 0x132   : > { %551 = vrot.lane.b32.xlu1 %v3409_v46, %s2758_s30 }
 0x133   : > { %1396 = vrot.lane.b32.xlu0 %v2420_v3, %s2757_s25 }
 0x134   : > { %v656_v22 = vpop.permute.xlu1 %655  ;;  %v530_v7 = vpop.permute.xlu0 %529 }
 0x135   : > { %v808_v14 = vsel %vm797_vm2, %v775_v11, %v656_v22 }
 0x136   : > { %1524 = vrot.lane.b32.xlu1 %v2943_v25, %s2758_s30  ;;  %2588 = vmatprep.mubr.msk.f32.mxu0 %vm838_vm3, %v808_v14  ;;  %v743_v25 = vsel %vm731_vm0, %v3116_v37, %v3079_v63  ;;  %v2423_v63 = vld [vmem:[%s2819_s24 + $0x12a] sm:$0xff] }
 0x137   : > { %1398 = vrot.lane.b32.xlu0 %v2421_v8, %s2757_s25  ;;  %v776_v47 = vsel %vm764_vm1, %v743_v25, %v530_v7  ;;  %v1206_v25 = vld [vmem:[%s2819_s24 + $0xa9] sm:$0xff] }
 0x138   : > { %v1629_v42 = vpop.permute.xlu1 %1628  ;;  %v1503_v21 = vpop.permute.xlu0 %1502 }
 0x139   : > { %v1778_v56 = vsel %vm797_vm2, %v1746_v31, %v1629_v42  ;;  %v1747_v57 = vsel %vm764_vm1, %v1715_v49, %v1503_v21  ;;  %v3513_v31 = vld [vmem:[%s2819_s24 + $0x150] sm:$0xff]  ;;  %v746_v42 = vsel %vm731_vm0, %v3180_v26, %v3096_v30 }
 0x13a   : > { %679 = vrot.lane.b32.xlu1 %v3426_v24, %s2759_s4  ;;  %2640 = vmatprep.mubr.msk.f32.mxu1 %vm838_vm3, %v1778_v56  ;;  %v3522_v21 = vld [vmem:[%s2819_s24 + $0x151] sm:$0xff] }
 0x13b   : > { %553 = vrot.lane.b32.xlu0 %v3432_v33, %s2758_s30 }
 0x13c   : > { %v1631_v5 = vpop.permute.xlu1 %1630  ;;  %v658_v48 = vpop.permute.xlu0 %657 }
 0x13d   : > { %v1779_v15 = vsel %vm797_vm2, %v1747_v57, %v1631_v5  ;;  %v809_v19 = vsel %vm797_vm2, %v776_v47, %v658_v48  ;;  %v1207_v57 = vld [vmem:[%s2819_s24 + $0xb1] sm:$0xff] }
 0x13e   : > { %1652 = vrot.lane.b32.xlu1 %v2422_v6, %s2759_s4  ;;  %2589 = vmatmul.mubr.msk.f32.gmra.mxu0 %vm838_vm3, %v809_v19  ;;  %v3536_v19 = vld [vmem:[%s2819_s24 + $0x158] sm:$0xff] }
 0x13f   : > { %1526 = vrot.lane.b32.xlu0 %v3447_v44, %s2758_s30  ;;  %2641 = vmatmul.mubr.msk.f32.gmra.mxu1 %vm838_vm3, %v1779_v15 }
 0x140   : > { %v532_v37 = vpop.permute.xlu1 %531  ;;  %v1377_v12 = vpop.permute.xlu0 %1376 }
 0x141   : > { %v777_v4 = vsel %vm764_vm1, %v744_v61, %v532_v37  ;;  %v1716_v28 = vsel %vm731_vm0, %v1204_v9, %v1377_v12  ;;  %v2426_v37 = vld [vmem:[%s2819_s24 + $0x152] sm:$0xff]  ;;  %v747_v12 = vsel %vm731_vm0, %v3199_v34, %v3094_v29  ;;  %v2427_v29 = vld [vmem:[%s2819_s24 + $0x15a] sm:$0xff] }
 0x142   : > { %1654 = vrot.lane.b32.xlu1 %v2423_v63, %s2759_s4  ;;  %v3550_v61 = vld [vmem:[%s2819_s24 + $0x159] sm:$0xff] }
 0x143   : > { %681 = vrot.lane.b32.xlu0 %v3447_v44, %s2759_s4 }
 0x144   : > { %v1505_v20 = vpop.permute.xlu1 %1504  ;;  %v1379_v38 = vpop.permute.xlu0 %1378 }
 0x145   : > { %v1748_v62 = vsel %vm764_vm1, %v1716_v28, %v1505_v20  ;;  %v1717_v8 = vsel %vm731_vm0, %v1205_v2, %v1379_v38 }
 0x146   : > { %555 = vrot.lane.b32.xlu1 %v3461_v54, %s2758_s30 }
 0x147   : > { %1400 = vrot.lane.b32.xlu0 %v2422_v6, %s2757_s25 }
 0x148   : > { %v660_v55 = vpop.permute.xlu1 %659 }
 0x149   : > { %v810_v3 = vsel %vm797_vm2, %v777_v4, %v660_v55  ;;  %v534_v53 = vpop.permute.xlu0 %533 }
 0x14a   : > { %1528 = vrot.lane.b32.xlu1 %v3470_v17, %s2758_s30  ;;  %2591 = vmatprep.mubr.msk.f32.mxu0 %vm838_vm3, %v810_v3  ;;  %v778_v11 = vsel %vm764_vm1, %v745_v60, %v534_v53 }
 0x14b   : > { %1402 = vrot.lane.b32.xlu0 %v2423_v63, %s2757_s25 }
 0x14c   : > { %v1633_v23 = vpop.permute.xlu1 %1632 }
 0x14d   : > { %v1780_v39 = vsel %vm797_vm2, %v1748_v62, %v1633_v23  ;;  %v1507_v52 = vpop.permute.xlu0 %1506  ;;  %v3565_v62 = vld [vmem:[%s2819_s24 + $0x168] sm:$0xff] }
 0x14e   : > { %683 = vrot.lane.b32.xlu1 %v3470_v17, %s2759_s4  ;;  %2643 = vmatprep.mubr.msk.f32.mxu1 %vm838_vm3, %v1780_v39  ;;  %v1749_v18 = vsel %vm764_vm1, %v1717_v8, %v1507_v52  ;;  %v4025_v23 = vld [vmem:[#allocation3_spill] sm:$0xff] }
 0x14f   : > { %557 = vrot.lane.b32.xlu0 %v3484_v35, %s2758_s30  ;;  %v748_v39 = vsel %vm731_vm0, %v3225_v50, %v4025_v23  ;;  %v3574_v52 = vld [vmem:[%s2819_s24 + $0x169] sm:$0xff] }
 0x150   : > { %v1635_v40 = vpop.permute.xlu1 %1634 }
 0x151   : > { %v1781_v13 = vsel %vm797_vm2, %v1749_v18, %v1635_v40  ;;  %v662_v22 = vpop.permute.xlu0 %661 }
 0x152   : > { %v811_v7 = vsel %vm797_vm2, %v778_v11, %v662_v22  ;;  %1656 = vrot.lane.b32.xlu1 %v2424_v59, %s2759_s4  ;;  %2644 = vmatmul.mubr.msk.f32.gmra.mxu1 %vm838_vm3, %v1781_v13  ;;  %v1209_v13 = vld [vmem:[%s2819_s24 + $0xc9] sm:$0xff] }
 0x153   : > { %1530 = vrot.lane.b32.xlu0 %v3498_v58, %s2758_s30  ;;  %2592 = vmatmul.mubr.msk.f32.gmra.mxu0 %vm838_vm3, %v811_v7 }
 0x154   : > { %v536_v51 = vpop.permute.xlu1 %535 }
 0x155   : > { %v1381_v14 = vpop.permute.xlu0 %1380  ;;  %v779_v56 = vsel %vm764_vm1, %v746_v42, %v536_v51  ;;  %v3588_v51 = vld [vmem:[%s2819_s24 + $0x170] sm:$0xff] }
 0x156   : > { %1658 = vrot.lane.b32.xlu1 %v2425_v27, %s2759_s4  ;;  %v1718_v30 = vsel %vm731_vm0, %v1206_v25, %v1381_v14 }
 0x157   : > { %685 = vrot.lane.b32.xlu0 %v3498_v58, %s2759_s4 }
 0x158   : > { %v1509_v16 = vpop.permute.xlu1 %1508 }
 0x159   : > { %v1383_v36 = vpop.permute.xlu0 %1382  ;;  %v1750_v26 = vsel %vm764_vm1, %v1718_v30, %v1509_v16  ;;  %v2428_v16 = vld [vmem:[%s2819_s24 + $0x16a] sm:$0xff] }
 0x15a   : > { %559 = vrot.lane.b32.xlu1 %v3513_v31, %s2758_s30  ;;  %v1719_v63 = vsel %vm731_vm0, %v1207_v57, %v1383_v36  ;;  %v4026_v36 = vld [vmem:[#allocation2_spill] sm:$0xff] }
 0x15b   : > { %1404 = vrot.lane.b32.xlu0 %v2424_v59, %s2757_s25  ;;  %v1208_v59 = vld [vmem:[%s2819_s24 + $0xc1] sm:$0xff]  ;;  %v749_v42 = vsel %vm731_vm0, %v3244_v10, %v4026_v36  ;;  %v2429_v10 = vld [vmem:[%s2819_s24 + $0x172] sm:$0xff] }
 0x15c   : > { %v664_v49 = vpop.permute.xlu1 %663 }
 0x15d   : > { %v812_v6 = vsel %vm797_vm2, %v779_v56, %v664_v49  ;;  %v538_v47 = vpop.permute.xlu0 %537  ;;  %v3602_v49 = vld [vmem:[%s2819_s24 + $0x171] sm:$0xff] }
 0x15e   : > { %1532 = vrot.lane.b32.xlu1 %v3522_v21, %s2758_s30  ;;  %2594 = vmatprep.mubr.msk.f32.mxu0 %vm838_vm3, %v812_v6  ;;  %v780_v4 = vsel %vm764_vm1, %v747_v12, %v538_v47 }
 0x15f   : > { %1406 = vrot.lane.b32.xlu0 %v2425_v27, %s2757_s25 }
 0x160   : > { %v1637_v5 = vpop.permute.xlu1 %1636 }
 0x161   : > { %v1782_v48 = vsel %vm797_vm2, %v1750_v26, %v1637_v5  ;;  %v1511_v15 = vpop.permute.xlu0 %1510 }
 0x162   : > { %687 = vrot.lane.b32.xlu1 %v3522_v21, %s2759_s4  ;;  %2646 = vmatprep.mubr.msk.f32.mxu1 %vm838_vm3, %v1782_v48  ;;  %v1751_v20 = vsel %vm764_vm1, %v1719_v63, %v1511_v15  ;;  %v2301_v48 = vld [vmem:[%s2819_s24 + $0x180] sm:$0xff] }
 0x163   : > { %561 = vrot.lane.b32.xlu0 %v3536_v19, %s2758_s30 }
 0x164   : > { %v1639_v38 = vpop.permute.xlu1 %1638 }
 0x165   : > { %v1783_v9 = vsel %vm797_vm2, %v1751_v20, %v1639_v38  ;;  %v666_v55 = vpop.permute.xlu0 %665  ;;  %v2398_v20 = vld [vmem:[%s2819_s24 + $0x181] sm:$0xff] }
 0x166   : > { %v813_v3 = vsel %vm797_vm2, %v780_v4, %v666_v55  ;;  %1660 = vrot.lane.b32.xlu1 %v2426_v37, %s2759_s4  ;;  %2647 = vmatmul.mubr.msk.f32.gmra.mxu1 %vm838_vm3, %v1783_v9  ;;  %v1210_v4 = vld [vmem:[%s2819_s24 + $0xd9] sm:$0xff] }
 0x167   : > { %1534 = vrot.lane.b32.xlu0 %v3550_v61, %s2758_s30  ;;  %2595 = vmatmul.mubr.msk.f32.gmra.mxu0 %vm838_vm3, %v813_v3 }
 0x168   : > { %v540_v34 = vpop.permute.xlu1 %539 }
 0x169   : > { %v1385_v53 = vpop.permute.xlu0 %1384  ;;  %v781_v8 = vsel %vm764_vm1, %v748_v39, %v540_v34  ;;  %v1211_v34 = vld [vmem:[%s2819_s24 + $0xe1] sm:$0xff] }
 0x16a   : > { %1662 = vrot.lane.b32.xlu1 %v2427_v29, %s2759_s4  ;;  %v1720_v50 = vsel %vm731_vm0, %v1208_v59, %v1385_v53  ;;  %v4028_v59 = vld [vmem:[#allocation4_spill] sm:$0xff] }
 0x16b   : > { %689 = vrot.lane.b32.xlu0 %v3550_v61, %s2759_s4 }
 0x16c   : > { %v1513_v28 = vpop.permute.xlu1 %1512 }
 0x16d   : > { %v1387_v2 = vpop.permute.xlu0 %1386  ;;  %v1752_v11 = vsel %vm764_vm1, %v1720_v50, %v1513_v28  ;;  %v2302_v28 = vld [vmem:[%s2819_s24 + $0x188] sm:$0xff] }
 0x16e   : > { %563 = vrot.lane.b32.xlu1 %v3565_v62, %s2758_s30  ;;  %v1721_v14 = vsel %vm731_vm0, %v1209_v13, %v1387_v2  ;;  %v2399_v50 = vld [vmem:[%s2819_s24 + $0x189] sm:$0xff] }
 0x16f   : > { %1408 = vrot.lane.b32.xlu0 %v2426_v37, %s2757_s25  ;;  %v4027_v37 = vld [vmem:[#allocation5_spill] sm:$0xff] }
 0x170   : > { %v668_v60 = vpop.permute.xlu1 %667  ;;  %v750_v12 = vsel %vm731_vm0, %v3271_v45, %v4027_v37 }
 0x171   : > { %v814_v18 = vsel %vm797_vm2, %v781_v8, %v668_v60  ;;  %v542_v40 = vpop.permute.xlu0 %541  ;;  %v2430_v8 = vld [vmem:[%s2819_s24 + $0x182] sm:$0xff]  ;;  %v751_v60 = vsel %vm731_vm0, %v3290_v41, %v4028_v59  ;;  %v2431_v41 = vld [vmem:[%s2819_s24 + $0x18a] sm:$0xff] }
 0x172   : > { %1536 = vrot.lane.b32.xlu1 %v3574_v52, %s2758_s30  ;;  %2597 = vmatprep.mubr.msk.f32.mxu0 %vm838_vm3, %v814_v18  ;;  %v782_v6 = vsel %vm764_vm1, %v749_v42, %v542_v40  ;;  %v4029_v42 = vld [vmem:[#allocation7_spill] sm:$0xff] }
 0x173   : > { %1410 = vrot.lane.b32.xlu0 %v2427_v29, %s2757_s25 }
 0x174   : > { %v1641_v22 = vpop.permute.xlu1 %1640 }
 0x175   : > { %v1784_v7 = vsel %vm797_vm2, %v1752_v11, %v1641_v22  ;;  %v1515_v27 = vpop.permute.xlu0 %1514 }
 0x176   : > { %691 = vrot.lane.b32.xlu1 %v3574_v52, %s2759_s4  ;;  %2649 = vmatprep.mubr.msk.f32.mxu1 %vm838_vm3, %v1784_v7  ;;  %v1753_v56 = vsel %vm764_vm1, %v1721_v14, %v1515_v27 }
 0x177   : > { %565 = vrot.lane.b32.xlu0 %v3588_v51, %s2758_s30 }
 0x178   : > { %v1643_v25 = vpop.permute.xlu1 %1642 }
 0x179   : > { %v1785_v47 = vsel %vm797_vm2, %v1753_v56, %v1643_v25  ;;  %v670_v30 = vpop.permute.xlu0 %669  ;;  %v752_v56 = vsel %vm731_vm0, %v3317_v32, %v4029_v42  ;;  %v1215_v42 = vld [vmem:[%s2819_s24 + $0x111] sm:$0xff] }
 0x17a   : > { %v815_v26 = vsel %vm797_vm2, %v782_v6, %v670_v30  ;;  %1664 = vrot.lane.b32.xlu1 %v2428_v16, %s2759_s4  ;;  %2650 = vmatmul.mubr.msk.f32.gmra.mxu1 %vm838_vm3, %v1785_v47  ;;  %v1212_v6 = vld [vmem:[%s2819_s24 + $0xf1] sm:$0xff]  ;;  %v3664_v30 = vld [vmem:[%s4007_s2] ss:$0 sm:$0xff] }
 0x17b   : > { %1538 = vrot.lane.b32.xlu0 %v3602_v49, %s2758_s30  ;;  %2598 = vmatmul.mubr.msk.f32.gmra.mxu0 %vm838_vm3, %v815_v26 }
 0x17c   : > { %v544_v57 = vpop.permute.xlu1 %543 }
 0x17d   : > { %v1389_v5 = vpop.permute.xlu0 %1388  ;;  %v783_v38 = vsel %vm764_vm1, %v750_v12, %v544_v57 }
 0x17e   : > { %1666 = vrot.lane.b32.xlu1 %v2429_v10, %s2759_s4  ;;  %v1722_v29 = vsel %vm731_vm0, %v1210_v4, %v1389_v5 }
 0x17f   : > { %693 = vrot.lane.b32.xlu0 %v3602_v49, %s2759_s4 }
 0x180   : > { %v1517_v15 = vpop.permute.xlu1 %1516 }
 0x181   : > { %v1391_v63 = vpop.permute.xlu0 %1390  ;;  %v1754_v45 = vsel %vm764_vm1, %v1722_v29, %v1517_v15 }
 0x182   : > { %567 = vrot.lane.b32.xlu1 %v2301_v48, %s2758_s30  ;;  %v1723_v39 = vsel %vm731_vm0, %v1211_v34, %v1391_v63  ;;  %v1213_v63 = vld [vmem:[%s2819_s24 + $0xf9] sm:$0xff] }
 0x183   : > { %1412 = vrot.lane.b32.xlu0 %v2428_v16, %s2757_s25 }
 0x184   : > { %v672_v9 = vpop.permute.xlu1 %671 }
 0x185   : > { %v816_v55 = vsel %vm797_vm2, %v783_v38, %v672_v9  ;;  %v546_v3 = vpop.permute.xlu0 %545 }
 0x186   : > { %1540 = vrot.lane.b32.xlu1 %v2398_v20, %s2758_s30  ;;  %2600 = vmatprep.mubr.msk.f32.mxu0 %vm838_vm3, %v816_v55  ;;  %v784_v11 = vsel %vm764_vm1, %v751_v60, %v546_v3 }
 0x187   : > { %1414 = vrot.lane.b32.xlu0 %v2429_v10, %s2757_s25 }
 0x188   : > { %v1645_v53 = vpop.permute.xlu1 %1644 }
 0x189   : > { %v1786_v2 = vsel %vm797_vm2, %v1754_v45, %v1645_v53  ;;  %v1519_v23 = vpop.permute.xlu0 %1518  ;;  %v4030_v45 = vld [vmem:[#allocation6_spill] sm:$0xff] }
 0x18a   : > { %695 = vrot.lane.b32.xlu1 %v2398_v20, %s2759_s4  ;;  %2652 = vmatprep.mubr.msk.f32.mxu1 %vm838_vm3, %v1786_v2  ;;  %v1755_v18 = vsel %vm764_vm1, %v1723_v39, %v1519_v23  ;;  %v753_v34 = vsel %vm731_vm0, %v3336_v1, %v4030_v45 }
 0x18b   : > { %569 = vrot.lane.b32.xlu0 %v2302_v28, %s2758_s30 }
 0x18c   : > { %v1647_v40 = vpop.permute.xlu1 %1646 }
 0x18d   : > { %v1787_v13 = vsel %vm797_vm2, %v1755_v18, %v1647_v40  ;;  %v674_v22 = vpop.permute.xlu0 %673  ;;  %v4031_v40 = vld [vmem:[#allocation9_spill] sm:$0xff] }
 0x18e   : > { %v817_v7 = vsel %vm797_vm2, %v784_v11, %v674_v22  ;;  %1668 = vrot.lane.b32.xlu1 %v2430_v8, %s2759_s4  ;;  %2653 = vmatmul.mubr.msk.f32.gmra.mxu1 %vm838_vm3, %v1787_v13  ;;  %v1214_v13 = vld [vmem:[%s2819_s24 + $0x109] sm:$0xff] }
 0x18f   : > { %1542 = vrot.lane.b32.xlu0 %v2399_v50, %s2758_s30  ;;  %2601 = vmatmul.mubr.msk.f32.gmra.mxu0 %vm838_vm3, %v817_v7 }
 0x190   : > { %v548_v27 = vpop.permute.xlu1 %547 }
 0x191   : > { %v1393_v14 = vpop.permute.xlu0 %1392  ;;  %v785_v25 = vsel %vm764_vm1, %v752_v56, %v548_v27 }
 0x192   : > { %1670 = vrot.lane.b32.xlu1 %v2431_v41, %s2759_s4  ;;  %v1724_v57 = vsel %vm731_vm0, %v1212_v6, %v1393_v14 }
 0x193   : > { %697 = vrot.lane.b32.xlu0 %v2399_v50, %s2759_s4  ;;  %v754_v50 = vsel %vm731_vm0, %v3363_v0, %v4031_v40 }
 0x194   : > { %v1521_v16 = vpop.permute.xlu1 %1520 }
 0x195   : > { %v1395_v36 = vpop.permute.xlu0 %1394  ;;  %v1756_v15 = vsel %vm764_vm1, %v1724_v57, %v1521_v16 }
 0x196   : > { %v1725_v29 = vsel %vm731_vm0, %v1213_v63, %v1395_v36 }
 0x198   : > { %v676_v47 = vpop.permute.xlu1 %675 }
 0x199   : > { %v818_v26 = vsel %vm797_vm2, %v785_v25, %v676_v47  ;;  %v550_v10 = vpop.permute.xlu0 %549 }
 0x19a   : > { %v2575_v32 = vpop.f32.mrf.mxu0  ;;  %2603 = vmatprep.mubr.msk.f32.mxu0 %vm838_vm3, %v818_v26  ;;  %v786_v2 = vsel %vm764_vm1, %v753_v34, %v550_v10 }
 0x19b   : > { %v1007_v5 = vadd.f32 %v2575_v32, %v3664_v30  ;;  %v2627_v48 = vpop.f32.mrf.mxu1 }
 0x19c   : > { %v1971_v37 = vadd.f32 %v2627_v48, %v3664_v30  ;;  %v1649_v12 = vpop.permute.xlu1 %1648  ;;  %v1001_v20 = vpop.f32.mrf.mxu0  ;;  %v4032_v48 = vld [vmem:[#allocation8_spill] sm:$0xff] }
 0x19d   : > { %1161 = vst.msk [vmem:[%s3670_s13 + $0x8] sm:$0xff] %vm731_vm0, %v1007_v5  ;;  %v1788_v38 = vsel %vm797_vm2, %v1756_v15, %v1649_v12  ;;  %v1965_v4 = vpop.f32.mrf.mxu1  ;;  %v1523_v9 = vpop.permute.xlu0 %1522  ;;  %v1002_v55 = vadd.f32 %v3664_v30, %v1001_v20  ;;  %v755_v15 = vsel %vm731_vm0, %v3382_v43, %v4032_v48 }
 0x19e   : > { %2467 = vst.msk [vmem:[%s3670_s13 + $0x108] sm:$0xff] %vm731_vm0, %v1971_v37  ;;  %v1966_v3 = vadd.f32 %v3664_v30, %v1965_v4  ;;  %2655 = vmatprep.mubr.msk.f32.mxu1 %vm838_vm3, %v1788_v38  ;;  %v1757_v53 = vsel %vm764_vm1, %v1725_v29, %v1523_v9  ;;  %v4033_v29 = vld [vmem:[#allocation11_spill] sm:$0xff] }
 0x19f   : > { %1160 = vst.msk [vmem:[%s3670_s13] sm:$0xff] %vm731_vm0, %v1002_v55  ;;  %v756_v45 = vsel %vm731_vm0, %v3409_v46, %v4033_v29 }
 0x1a0   : > { %2466 = vst.msk [vmem:[%s3670_s13 + $0x100] sm:$0xff] %vm731_vm0, %v1966_v3  ;;  %v1651_v28 = vpop.permute.xlu1 %1650 }
 0x1a1   : > { %v1789_v23 = vsel %vm797_vm2, %v1757_v53, %v1651_v28  ;;  %v678_v39 = vpop.permute.xlu0 %677 }
 0x1a2   : > { %v819_v8 = vsel %vm797_vm2, %v786_v2, %v678_v39  ;;  %2656 = vmatmul.mubr.msk.f32.gmra.mxu1 %vm838_vm3, %v1789_v23 }
 0x1a3   : > { %2604 = vmatmul.mubr.msk.f32.gmra.mxu0 %vm838_vm3, %v819_v8 }
 0x1a4   : > { %v552_v59 = vpop.permute.xlu1 %551 }
 0x1a5   : > { %v1397_v1 = vpop.permute.xlu0 %1396  ;;  %v787_v11 = vsel %vm764_vm1, %v754_v50, %v552_v59 }
 0x1a6   : > { %v1726_v14 = vsel %vm731_vm0, %v1214_v13, %v1397_v1 }
 0x1a8   : > { %v1525_v60 = vpop.permute.xlu1 %1524 }
 0x1a9   : > { %v1399_v18 = vpop.permute.xlu0 %1398  ;;  %v1758_v0 = vsel %vm764_vm1, %v1726_v14, %v1525_v60 }
 0x1aa   : > { %v1727_v5 = vsel %vm731_vm0, %v1215_v42, %v1399_v18 }
 0x1ac   : > { %v680_v22 = vpop.permute.xlu1 %679 }
 0x1ad   : > { %v820_v7 = vsel %vm797_vm2, %v787_v11, %v680_v22  ;;  %v554_v41 = vpop.permute.xlu0 %553 }
 0x1ae   : > { %v2578_v27 = vpop.f32.mrf.mxu0  ;;  %2606 = vmatprep.mubr.msk.f32.mxu0 %vm838_vm3, %v820_v7  ;;  %v788_v12 = vsel %vm764_vm1, %v755_v15, %v554_v41  ;;  %v4034_v7 = vld [vmem:[#allocation10_spill] sm:$0xff] }
 0x1af   : > { %v1017_v16 = vadd.f32 %v2578_v27, %v3664_v30  ;;  %v2630_v36 = vpop.f32.mrf.mxu1  ;;  %v757_v41 = vsel %vm731_vm0, %v3432_v33, %v4034_v7 }
 0x1b0   : > { %v1981_v56 = vadd.f32 %v2630_v36, %v3664_v30  ;;  %v1653_v25 = vpop.permute.xlu1 %1652  ;;  %v1011_v6 = vpop.f32.mrf.mxu0 }
 0x1b1   : > { %1163 = vst.msk [vmem:[%s3670_s13 + $0x18] sm:$0xff] %vm731_vm0, %v1017_v16  ;;  %v1790_v47 = vsel %vm797_vm2, %v1758_v0, %v1653_v25  ;;  %v1975_v26 = vpop.f32.mrf.mxu1  ;;  %v1527_v10 = vpop.permute.xlu0 %1526  ;;  %v1012_v32 = vadd.f32 %v3664_v30, %v1011_v6  ;;  %v4035_v6 = vld [vmem:[#allocation13_spill] sm:$0xff] }
 0x1b2   : > { %2469 = vst.msk [vmem:[%s3670_s13 + $0x118] sm:$0xff] %vm731_vm0, %v1981_v56  ;;  %v1976_v57 = vadd.f32 %v3664_v30, %v1975_v26  ;;  %2658 = vmatprep.mubr.msk.f32.mxu1 %vm838_vm3, %v1790_v47  ;;  %v1759_v63 = vsel %vm764_vm1, %v1727_v5, %v1527_v10  ;;  %v758_v47 = vsel %vm731_vm0, %v3461_v54, %v4035_v6 }
 0x1b3   : > { %1162 = vst.msk [vmem:[%s3670_s13 + $0x10] sm:$0xff] %vm731_vm0, %v1012_v32 }
 0x1b4   : > { %2468 = vst.msk [vmem:[%s3670_s13 + $0x110] sm:$0xff] %vm731_vm0, %v1976_v57  ;;  %v1655_v37 = vpop.permute.xlu1 %1654 }
 0x1b5   : > { %v1791_v20 = vsel %vm797_vm2, %v1759_v63, %v1655_v37  ;;  %v682_v38 = vpop.permute.xlu0 %681 }
 0x1b6   : > { %v821_v4 = vsel %vm797_vm2, %v788_v12, %v682_v38  ;;  %2659 = vmatmul.mubr.msk.f32.gmra.mxu1 %vm838_vm3, %v1791_v20 }
 0x1b7   : > { %2607 = vmatmul.mubr.msk.f32.gmra.mxu0 %vm838_vm3, %v821_v4 }
 0x1b8   : > { %v556_v9 = vpop.permute.xlu1 %555 }
 0x1b9   : > { %v1401_v55 = vpop.permute.xlu0 %1400  ;;  %v789_v34 = vsel %vm764_vm1, %v756_v45, %v556_v9 }
 0x1ba   : > { %v1728_v39 = vsel %vm731_vm0, %v3426_v24, %v1401_v55 }
 0x1bc   : > { %v1529_v3 = vpop.permute.xlu1 %1528 }
 0x1bd   : > { %v1403_v43 = vpop.permute.xlu0 %1402  ;;  %v1760_v46 = vsel %vm764_vm1, %v1728_v39, %v1529_v3 }
 0x1be   : > { %v1729_v22 = vsel %vm731_vm0, %v3447_v44, %v1403_v43  ;;  %v4036_v43 = vld [vmem:[#allocation12_spill] sm:$0xff] }
 0x1bf   : > { %v759_v29 = vsel %vm731_vm0, %v3484_v35, %v4036_v43 }
 0x1c0   : > { %v684_v53 = vpop.permute.xlu1 %683 }
 0x1c1   : > { %v822_v28 = vsel %vm797_vm2, %v789_v34, %v684_v53  ;;  %v558_v2 = vpop.permute.xlu0 %557 }
 0x1c2   : > { %v2581_v23 = vpop.f32.mrf.mxu0  ;;  %2609 = vmatprep.mubr.msk.f32.mxu0 %vm838_vm3, %v822_v28  ;;  %v790_v16 = vsel %vm764_vm1, %v757_v41, %v558_v2 }
 0x1c3   : > { %v1027_v8 = vadd.f32 %v2581_v23, %v3664_v30  ;;  %v2633_v59 = vpop.f32.mrf.mxu1 }
 0x1c4   : > { %v1991_v1 = vadd.f32 %v2633_v59, %v3664_v30  ;;  %v1657_v60 = vpop.permute.xlu1 %1656  ;;  %v1021_v18 = vpop.f32.mrf.mxu0  ;;  %v4037_v59 = vld [vmem:[#allocation15_spill] sm:$0xff] }
 0x1c5   : > { %1165 = vst.msk [vmem:[%s3670_s13 + $0x28] sm:$0xff] %vm731_vm0, %v1027_v8  ;;  %v1792_v40 = vsel %vm797_vm2, %v1760_v46, %v1657_v60  ;;  %v1985_v50 = vpop.f32.mrf.mxu1  ;;  %v1531_v11 = vpop.permute.xlu0 %1530  ;;  %v1022_v13 = vadd.f32 %v3664_v30, %v1021_v18  ;;  %v760_v46 = vsel %vm731_vm0, %v3513_v31, %v4037_v59 }
 0x1c6   : > { %2471 = vst.msk [vmem:[%s3670_s13 + $0x128] sm:$0xff] %vm731_vm0, %v1991_v1  ;;  %v1986_v24 = vadd.f32 %v3664_v30, %v1985_v50  ;;  %2661 = vmatprep.mubr.msk.f32.mxu1 %vm838_vm3, %v1792_v40  ;;  %v1761_v27 = vsel %vm764_vm1, %v1729_v22, %v1531_v11 }
 0x1c7   : > { %1164 = vst.msk [vmem:[%s3670_s13 + $0x20] sm:$0xff] %vm731_vm0, %v1022_v13 }
 0x1c8   : > { %2470 = vst.msk [vmem:[%s3670_s13 + $0x120] sm:$0xff] %vm731_vm0, %v1986_v24  ;;  %v1659_v14 = vpop.permute.xlu1 %1658 }
 0x1c9   : > { %v1793_v36 = vsel %vm797_vm2, %v1761_v27, %v1659_v14  ;;  %v686_v0 = vpop.permute.xlu0 %685 }
 0x1ca   : > { %v823_v42 = vsel %vm797_vm2, %v790_v16, %v686_v0  ;;  %2662 = vmatmul.mubr.msk.f32.gmra.mxu1 %vm838_vm3, %v1793_v36 }
 0x1cb   : > { %2610 = vmatmul.mubr.msk.f32.gmra.mxu0 %vm838_vm3, %v823_v42  ;;  %v4038_v42 = vld [vmem:[#allocation14_spill] sm:$0xff] }
 0x1cc   : > { %v560_v44 = vpop.permute.xlu1 %559 }
 0x1cd   : > { %v1405_v56 = vpop.permute.xlu0 %1404  ;;  %v791_v26 = vsel %vm764_vm1, %v758_v47, %v560_v44  ;;  %v761_v44 = vsel %vm731_vm0, %v3536_v19, %v4038_v42 }
 0x1ce   : > { %v1730_v48 = vsel %vm731_vm0, %v3470_v17, %v1405_v56 }
 0x1d0   : > { %v1533_v25 = vpop.permute.xlu1 %1532 }
 0x1d1   : > { %v1407_v33 = vpop.permute.xlu0 %1406  ;;  %v1762_v54 = vsel %vm764_vm1, %v1730_v48, %v1533_v25 }
 0x1d2   : > { %v1731_v3 = vsel %vm731_vm0, %v3498_v58, %v1407_v33 }
 0x1d4   : > { %v688_v10 = vpop.permute.xlu1 %687 }
 0x1d5   : > { %v824_v32 = vsel %vm797_vm2, %v791_v26, %v688_v10  ;;  %v562_v57 = vpop.permute.xlu0 %561 }
 0x1d6   : > { %v2584_v5 = vpop.f32.mrf.mxu0  ;;  %2612 = vmatprep.mubr.msk.f32.mxu0 %vm838_vm3, %v824_v32  ;;  %v792_v53 = vsel %vm764_vm1, %v759_v29, %v562_v57  ;;  %v4039_v57 = vld [vmem:[#allocation17_spill] sm:$0xff] }
 0x1d7   : > { %v1037_v15 = vadd.f32 %v2584_v5, %v3664_v30  ;;  %v2636_v63 = vpop.f32.mrf.mxu1  ;;  %v762_v5 = vsel %vm731_vm0, %v3565_v62, %v4039_v57 }
 0x1d8   : > { %v2001_v37 = vadd.f32 %v2636_v63, %v3664_v30  ;;  %v1661_v12 = vpop.permute.xlu1 %1660  ;;  %v1031_v20 = vpop.f32.mrf.mxu0 }
 0x1d9   : > { %1167 = vst.msk [vmem:[%s3670_s13 + $0x38] sm:$0xff] %vm731_vm0, %v1037_v15  ;;  %v1794_v38 = vsel %vm797_vm2, %v1762_v54, %v1661_v12  ;;  %v1995_v4 = vpop.f32.mrf.mxu1  ;;  %v1535_v9 = vpop.permute.xlu0 %1534  ;;  %v1032_v55 = vadd.f32 %v3664_v30, %v1031_v20 }
 0x1da   : > { %2473 = vst.msk [vmem:[%s3670_s13 + $0x138] sm:$0xff] %vm731_vm0, %v2001_v37  ;;  %v1996_v17 = vadd.f32 %v3664_v30, %v1995_v4  ;;  %2664 = vmatprep.mubr.msk.f32.mxu1 %vm838_vm3, %v1794_v38  ;;  %v1763_v45 = vsel %vm764_vm1, %v1731_v3, %v1535_v9 }
 0x1db   : > { %1166 = vst.msk [vmem:[%s3670_s13 + $0x30] sm:$0xff] %vm731_vm0, %v1032_v55 }
 0x1dc   : > { %2472 = vst.msk [vmem:[%s3670_s13 + $0x130] sm:$0xff] %vm731_vm0, %v1996_v17  ;;  %v1663_v34 = vpop.permute.xlu1 %1662 }
 0x1dd   : > { %v1795_v28 = vsel %vm797_vm2, %v1763_v45, %v1663_v34  ;;  %v690_v2 = vpop.permute.xlu0 %689  ;;  %v4040_v34 = vld [vmem:[#allocation16_spill] sm:$0xff] }
 0x1de   : > { %v825_v23 = vsel %vm797_vm2, %v792_v53, %v690_v2  ;;  %2665 = vmatmul.mubr.msk.f32.gmra.mxu1 %vm838_vm3, %v1795_v28  ;;  %v763_v53 = vsel %vm731_vm0, %v3588_v51, %v4040_v34 }
 0x1df   : > { %2613 = vmatmul.mubr.msk.f32.gmra.mxu0 %vm838_vm3, %v825_v23 }
 0x1e0   : > { %v564_v58 = vpop.permute.xlu1 %563 }
 0x1e1   : > { %v1409_v39 = vpop.permute.xlu0 %1408  ;;  %v793_v1 = vsel %vm764_vm1, %v760_v46, %v564_v58 }
 0x1e2   : > { %v1732_v11 = vsel %vm731_vm0, %v3522_v21, %v1409_v39 }
 0x1e4   : > { %v1537_v8 = vpop.permute.xlu1 %1536 }
 0x1e5   : > { %v1411_v35 = vpop.permute.xlu0 %1410  ;;  %v1764_v31 = vsel %vm764_vm1, %v1732_v11, %v1537_v8 }
 0x1e6   : > { %v1733_v0 = vsel %vm731_vm0, %v3550_v61, %v1411_v35 }
 0x1e8   : > { %v692_v60 = vpop.permute.xlu1 %691 }
 0x1e9   : > { %v826_v18 = vsel %vm797_vm2, %v793_v1, %v692_v60  ;;  %v566_v40 = vpop.permute.xlu0 %565 }
 0x1ea   : > { %v2587_v50 = vpop.f32.mrf.mxu0  ;;  %2615 = vmatprep.mubr.msk.f32.mxu0 %vm838_vm3, %v826_v18  ;;  %v794_v33 = vsel %vm764_vm1, %v761_v44, %v566_v40 }
 0x1eb   : > { %v1047_v13 = vadd.f32 %v2587_v50, %v3664_v30  ;;  %v2639_v24 = vpop.f32.mrf.mxu1 }
 0x1ec   : > { %v2011_v22 = vadd.f32 %v2639_v24, %v3664_v30  ;;  %v1665_v7 = vpop.permute.xlu1 %1664  ;;  %v1041_v41 = vpop.f32.mrf.mxu0 }
 0x1ed   : > { %1169 = vst.msk [vmem:[%s3670_s13 + $0x48] sm:$0xff] %vm731_vm0, %v1047_v13  ;;  %v1796_v27 = vsel %vm797_vm2, %v1764_v31, %v1665_v7  ;;  %v2005_v14 = vpop.f32.mrf.mxu1  ;;  %v1539_v16 = vpop.permute.xlu0 %1538  ;;  %v1042_v36 = vadd.f32 %v3664_v30, %v1041_v41 }
 0x1ee   : > { %2475 = vst.msk [vmem:[%s3670_s13 + $0x148] sm:$0xff] %vm731_vm0, %v2011_v22  ;;  %v2006_v21 = vadd.f32 %v3664_v30, %v2005_v14  ;;  %2667 = vmatprep.mubr.msk.f32.mxu1 %vm838_vm3, %v1796_v27  ;;  %v1765_v56 = vsel %vm764_vm1, %v1733_v0, %v1539_v16 }
 0x1ef   : > { %1168 = vst.msk [vmem:[%s3670_s13 + $0x40] sm:$0xff] %vm731_vm0, %v1042_v36 }
 0x1f0   : > { %2474 = vst.msk [vmem:[%s3670_s13 + $0x140] sm:$0xff] %vm731_vm0, %v2006_v21  ;;  %v1667_v25 = vpop.permute.xlu1 %1666 }
 0x1f1   : > { %v1797_v6 = vsel %vm797_vm2, %v1765_v56, %v1667_v25  ;;  %v694_v47 = vpop.permute.xlu0 %693 }
 0x1f2   : > { %v827_v26 = vsel %vm797_vm2, %v794_v33, %v694_v47  ;;  %2668 = vmatmul.mubr.msk.f32.gmra.mxu1 %vm838_vm3, %v1797_v6 }
 0x1f3   : > { %2616 = vmatmul.mubr.msk.f32.gmra.mxu0 %vm838_vm3, %v827_v26 }
 0x1f4   : > { %v568_v61 = vpop.permute.xlu1 %567 }
 0x1f5   : > { %v1413_v10 = vpop.permute.xlu0 %1412  ;;  %v795_v48 = vsel %vm764_vm1, %v762_v5, %v568_v61 }
 0x1f6   : > { %v1734_v12 = vsel %vm731_vm0, %v3574_v52, %v1413_v10 }
 0x1f8   : > { %v1541_v32 = vpop.permute.xlu1 %1540 }
 0x1f9   : > { %v1415_v19 = vpop.permute.xlu0 %1414  ;;  %v1766_v62 = vsel %vm764_vm1, %v1734_v12, %v1541_v32 }
 0x1fa   : > { %v1735_v45 = vsel %vm731_vm0, %v3602_v49, %v1415_v19 }
 0x1fc   : > { %v696_v15 = vpop.permute.xlu1 %695 }
 0x1fd   : > { %v828_v63 = vsel %vm797_vm2, %v795_v48, %v696_v15  ;;  %v570_v54 = vpop.permute.xlu0 %569 }
 0x1fe   : > { %v2590_v37 = vpop.f32.mrf.mxu0  ;;  %2618 = vmatprep.mubr.msk.f32.mxu0 %vm838_vm3, %v828_v63  ;;  %v796_v23 = vsel %vm764_vm1, %v763_v53, %v570_v54 }
 0x1ff   : > { %v1057_v20 = vadd.f32 %v2590_v37, %v3664_v30  ;;  %v2642_v38 = vpop.f32.mrf.mxu1 }
 0x200   : > { %v2021_v4 = vadd.f32 %v2642_v38, %v3664_v30  ;;  %v1669_v9 = vpop.permute.xlu1 %1668  ;;  %v1051_v55 = vpop.f32.mrf.mxu0 }
 0x201   : > { %1171 = vst.msk [vmem:[%s3670_s13 + $0x58] sm:$0xff] %vm731_vm0, %v1057_v20  ;;  %v1798_v17 = vsel %vm797_vm2, %v1766_v62, %v1669_v9  ;;  %v2015_v3 = vpop.f32.mrf.mxu1  ;;  %v1543_v43 = vpop.permute.xlu0 %1542  ;;  %v1052_v29 = vadd.f32 %v3664_v30, %v1051_v55 }
 0x202   : > { %2477 = vst.msk [vmem:[%s3670_s13 + $0x158] sm:$0xff] %vm731_vm0, %v2021_v4  ;;  %v2016_v52 = vadd.f32 %v3664_v30, %v2015_v3  ;;  %2670 = vmatprep.mubr.msk.f32.mxu1 %vm838_vm3, %v1798_v17  ;;  %v1767_v28 = vsel %vm764_vm1, %v1735_v45, %v1543_v43 }
 0x203   : > { %1170 = vst.msk [vmem:[%s3670_s13 + $0x50] sm:$0xff] %vm731_vm0, %v1052_v29 }
 0x204   : > { %2476 = vst.msk [vmem:[%s3670_s13 + $0x150] sm:$0xff] %vm731_vm0, %v2016_v52  ;;  %v1671_v2 = vpop.permute.xlu1 %1670 }
 0x205   : > { %v1799_v58 = vsel %vm797_vm2, %v1767_v28, %v1671_v2  ;;  %v698_v49 = vpop.permute.xlu0 %697 }
 0x206   : > { %v829_v39 = vsel %vm797_vm2, %v796_v23, %v698_v49  ;;  %2671 = vmatmul.mubr.msk.f32.gmra.mxu1 %vm838_vm3, %v1799_v58 }
 0x207   : > { %2619 = vmatmul.mubr.msk.f32.gmra.mxu0 %vm838_vm3, %v829_v39 }
 0x212   : > { %v2645_v51 = vpop.f32.mrf.mxu1 }
 0x213   : > { %v2593_v8 = vpop.f32.mrf.mxu0  ;;  %v2031_v35 = vadd.f32 %v2645_v51, %v3664_v30 }
 0x214   : > { %v1067_v59 = vadd.f32 %v2593_v8, %v3664_v30  ;;  %v2025_v46 = vpop.f32.mrf.mxu1 }
 0x215   : > { %2479 = vst.msk [vmem:[%s3670_s13 + $0x168] sm:$0xff] %vm731_vm0, %v2031_v35  ;;  %v1061_v1 = vpop.f32.mrf.mxu0  ;;  %v2026_v60 = vadd.f32 %v3664_v30, %v2025_v46 }
 0x216   : > { %1173 = vst.msk [vmem:[%s3670_s13 + $0x68] sm:$0xff] %vm731_vm0, %v1067_v59  ;;  %v1062_v18 = vadd.f32 %v3664_v30, %v1061_v1 }
 0x217   : > { %2478 = vst.msk [vmem:[%s3670_s13 + $0x160] sm:$0xff] %vm731_vm0, %v2026_v60 }
 0x218   : > { %1172 = vst.msk [vmem:[%s3670_s13 + $0x60] sm:$0xff] %vm731_vm0, %v1062_v18 }
 0x226   : > { %v2648_v40 = vpop.f32.mrf.mxu1 }
 0x227   : > { %v2596_v50 = vpop.f32.mrf.mxu0  ;;  %v2041_v11 = vadd.f32 %v2648_v40, %v3664_v30 }
 0x228   : > { %v1077_v13 = vadd.f32 %v2596_v50, %v3664_v30  ;;  %v2035_v24 = vpop.f32.mrf.mxu1 }
 0x229   : > { %2481 = vst.msk [vmem:[%s3670_s13 + $0x178] sm:$0xff] %vm731_vm0, %v2041_v11  ;;  %v1071_v31 = vpop.f32.mrf.mxu0  ;;  %v2036_v22 = vadd.f32 %v3664_v30, %v2035_v24 }
 0x22a   : > { %1175 = vst.msk [vmem:[%s3670_s13 + $0x78] sm:$0xff] %vm731_vm0, %v1077_v13  ;;  %v1072_v7 = vadd.f32 %v3664_v30, %v1071_v31 }
 0x22b   : > { %2480 = vst.msk [vmem:[%s3670_s13 + $0x170] sm:$0xff] %vm731_vm0, %v2036_v22 }
 0x22c   : > { %1174 = vst.msk [vmem:[%s3670_s13 + $0x70] sm:$0xff] %vm731_vm0, %v1072_v7 }
 0x23a   : > { %v2651_v41 = vpop.f32.mrf.mxu1 }
 0x23b   : > { %v2599_v27 = vpop.f32.mrf.mxu0  ;;  %v2051_v14 = vadd.f32 %v2651_v41, %v3664_v30 }
 0x23c   : > { %v1087_v16 = vadd.f32 %v2599_v27, %v3664_v30  ;;  %v2045_v36 = vpop.f32.mrf.mxu1 }
 0x23d   : > { %2483 = vst.msk [vmem:[%s3670_s13 + $0x188] sm:$0xff] %vm731_vm0, %v2051_v14  ;;  %v1081_v21 = vpop.f32.mrf.mxu0  ;;  %v2046_v0 = vadd.f32 %v3664_v30, %v2045_v36 }
 0x23e   : > { %1177 = vst.msk [vmem:[%s3670_s13 + $0x88] sm:$0xff] %vm731_vm0, %v1087_v16  ;;  %v1082_v42 = vadd.f32 %v3664_v30, %v1081_v21 }
 0x23f   : > { %2482 = vst.msk [vmem:[%s3670_s13 + $0x180] sm:$0xff] %vm731_vm0, %v2046_v0 }
 0x240   : > { %1176 = vst.msk [vmem:[%s3670_s13 + $0x80] sm:$0xff] %vm731_vm0, %v1082_v42 }
 0x24e   : > { %v2654_v44 = vpop.f32.mrf.mxu1 }
 0x24f   : > { %v2602_v56 = vpop.f32.mrf.mxu0  ;;  %v2061_v25 = vadd.f32 %v2654_v44, %v3664_v30 }
 0x250   : > { %v1097_v33 = vadd.f32 %v2602_v56, %v3664_v30  ;;  %v2055_v6 = vpop.f32.mrf.mxu1 }
 0x251   : > { %2485 = vst.msk [vmem:[%s3670_s13 + $0x198] sm:$0xff] %vm731_vm0, %v2061_v25  ;;  %v1091_v47 = vpop.f32.mrf.mxu0  ;;  %v2056_v26 = vadd.f32 %v3664_v30, %v2055_v6 }
 0x252   : > { %1179 = vst.msk [vmem:[%s3670_s13 + $0x98] sm:$0xff] %vm731_vm0, %v1097_v33  ;;  %v1092_v61 = vadd.f32 %v3664_v30, %v1091_v47 }
 0x253   : > { %2484 = vst.msk [vmem:[%s3670_s13 + $0x190] sm:$0xff] %vm731_vm0, %v2056_v26 }
 0x254   : > { %1178 = vst.msk [vmem:[%s3670_s13 + $0x90] sm:$0xff] %vm731_vm0, %v1092_v61 }
 0x262   : > { %v2657_v10 = vpop.f32.mrf.mxu1 }
 0x263   : > { %v2605_v32 = vpop.f32.mrf.mxu0  ;;  %v2071_v19 = vadd.f32 %v2657_v10, %v3664_v30 }
 0x264   : > { %v1107_v57 = vadd.f32 %v2605_v32, %v3664_v30  ;;  %v2065_v5 = vpop.f32.mrf.mxu1 }
 0x265   : > { %2487 = vst.msk [vmem:[%s3670_s13 + $0x1a8] sm:$0xff] %vm731_vm0, %v2071_v19  ;;  %v1101_v48 = vpop.f32.mrf.mxu0  ;;  %v2066_v15 = vadd.f32 %v3664_v30, %v2065_v5 }
 0x266   : > { %1181 = vst.msk [vmem:[%s3670_s13 + $0xa8] sm:$0xff] %vm731_vm0, %v1107_v57  ;;  %v1102_v63 = vadd.f32 %v3664_v30, %v1101_v48 }
 0x267   : > { %2486 = vst.msk [vmem:[%s3670_s13 + $0x1a0] sm:$0xff] %vm731_vm0, %v2066_v15 }
 0x268   : > { %1180 = vst.msk [vmem:[%s3670_s13 + $0xa0] sm:$0xff] %vm731_vm0, %v1102_v63 }
 0x276   : > { %v2660_v54 = vpop.f32.mrf.mxu1 }
 0x277   : > { %v2608_v37 = vpop.f32.mrf.mxu0  ;;  %v2081_v12 = vadd.f32 %v2660_v54, %v3664_v30 }
 0x278   : > { %v1117_v20 = vadd.f32 %v2608_v37, %v3664_v30  ;;  %v2075_v38 = vpop.f32.mrf.mxu1 }
 0x279   : > { %2489 = vst.msk [vmem:[%s3670_s13 + $0x1b8] sm:$0xff] %vm731_vm0, %v2081_v12  ;;  %v1111_v62 = vpop.f32.mrf.mxu0  ;;  %v2076_v4 = vadd.f32 %v3664_v30, %v2075_v38 }
 0x27a   : > { %1183 = vst.msk [vmem:[%s3670_s13 + $0xb8] sm:$0xff] %vm731_vm0, %v1117_v20  ;;  %v1112_v9 = vadd.f32 %v3664_v30, %v1111_v62 }
 0x27b   : > { %2488 = vst.msk [vmem:[%s3670_s13 + $0x1b0] sm:$0xff] %vm731_vm0, %v2076_v4 }
 0x27c   : > { %1182 = vst.msk [vmem:[%s3670_s13 + $0xb0] sm:$0xff] %vm731_vm0, %v1112_v9 }
 0x28a   : > { %v2663_v55 = vpop.f32.mrf.mxu1 }
 0x28b   : > { %v2611_v17 = vpop.f32.mrf.mxu0  ;;  %v2091_v3 = vadd.f32 %v2663_v55, %v3664_v30 }
 0x28c   : > { %v1127_v43 = vadd.f32 %v2611_v17, %v3664_v30  ;;  %v2085_v29 = vpop.f32.mrf.mxu1 }
 0x28d   : > { %2491 = vst.msk [vmem:[%s3670_s13 + $0x1c8] sm:$0xff] %vm731_vm0, %v2091_v3  ;;  %v1121_v52 = vpop.f32.mrf.mxu0  ;;  %v2086_v45 = vadd.f32 %v3664_v30, %v2085_v29 }
 0x28e   : > { %1185 = vst.msk [vmem:[%s3670_s13 + $0xc8] sm:$0xff] %vm731_vm0, %v1127_v43  ;;  %v1122_v34 = vadd.f32 %v3664_v30, %v1121_v52 }
 0x28f   : > { %2490 = vst.msk [vmem:[%s3670_s13 + $0x1c0] sm:$0xff] %vm731_vm0, %v2086_v45 }
 0x290   : > { %1184 = vst.msk [vmem:[%s3670_s13 + $0xc0] sm:$0xff] %vm731_vm0, %v1122_v34 }
 0x29e   : > { %v2666_v53 = vpop.f32.mrf.mxu1 }
 0x29f   : > { %v2614_v28 = vpop.f32.mrf.mxu0  ;;  %v2101_v2 = vadd.f32 %v2666_v53, %v3664_v30 }
 0x2a0   : > { %v1137_v23 = vadd.f32 %v2614_v28, %v3664_v30  ;;  %v2095_v58 = vpop.f32.mrf.mxu1 }
 0x2a1   : > { %2493 = vst.msk [vmem:[%s3670_s13 + $0x1d8] sm:$0xff] %vm731_vm0, %v2101_v2  ;;  %v1131_v49 = vpop.f32.mrf.mxu0  ;;  %v2096_v39 = vadd.f32 %v3664_v30, %v2095_v58 }
 0x2a2   : > { %1187 = vst.msk [vmem:[%s3670_s13 + $0xd8] sm:$0xff] %vm731_vm0, %v1137_v23  ;;  %v1132_v51 = vadd.f32 %v3664_v30, %v1131_v49 }
 0x2a3   : > { %2492 = vst.msk [vmem:[%s3670_s13 + $0x1d0] sm:$0xff] %vm731_vm0, %v2096_v39 }
 0x2a4   : > { %1186 = vst.msk [vmem:[%s3670_s13 + $0xd0] sm:$0xff] %vm731_vm0, %v1132_v51 }
 0x2b2   : > { %v2669_v8 = vpop.f32.mrf.mxu1 }
 0x2b3   : > { %v2617_v35 = vpop.f32.mrf.mxu0  ;;  %v2111_v59 = vadd.f32 %v2669_v8, %v3664_v30 }
 0x2b4   : > { %v1147_v46 = vadd.f32 %v2617_v35, %v3664_v30  ;;  %v2105_v1 = vpop.f32.mrf.mxu1 }
 0x2b5   : > { %2495 = vst.msk [vmem:[%s3670_s13 + $0x1e8] sm:$0xff] %vm731_vm0, %v2111_v59  ;;  %v1141_v60 = vpop.f32.mrf.mxu0  ;;  %v2106_v18 = vadd.f32 %v3664_v30, %v2105_v1 }
 0x2b6   : > { %1189 = vst.msk [vmem:[%s3670_s13 + $0xe8] sm:$0xff] %vm731_vm0, %v1147_v46  ;;  %v1142_v40 = vadd.f32 %v3664_v30, %v1141_v60 }
 0x2b7   : > { %2494 = vst.msk [vmem:[%s3670_s13 + $0x1e0] sm:$0xff] %vm731_vm0, %v2106_v18 }
 0x2b8   : > { %1188 = vst.msk [vmem:[%s3670_s13 + $0xe0] sm:$0xff] %vm731_vm0, %v1142_v40 }
 0x2c6   : > { %v2672_v50 = vpop.f32.mrf.mxu1 }
 0x2c7   : > { %v2620_v11 = vpop.f32.mrf.mxu0  ;;  %v2121_v13 = vadd.f32 %v2672_v50, %v3664_v30 }
 0x2c8   : > { %v1157_v24 = vadd.f32 %v2620_v11, %v3664_v30  ;;  %v2115_v31 = vpop.f32.mrf.mxu1 }
 0x2c9   : > { %2497 = vst.msk [vmem:[%s3670_s13 + $0x1f8] sm:$0xff] %vm731_vm0, %v2121_v13  ;;  %v1151_v22 = vpop.f32.mrf.mxu0  ;;  %v2116_v7 = vadd.f32 %v3664_v30, %v2115_v31 }
 0x2ca   : > { %1191 = vst.msk [vmem:[%s3670_s13 + $0xf8] sm:$0xff] %vm731_vm0, %v1157_v24  ;;  %v1152_v41 = vadd.f32 %v3664_v30, %v1151_v22 }
 0x2cb   : > { %2496 = vst.msk [vmem:[%s3670_s13 + $0x1f0] sm:$0xff] %vm731_vm0, %v2116_v7 }
 0x2cc   : > { %1190 = vst.msk [vmem:[%s3670_s13 + $0xf0] sm:$0xff] %vm731_vm0, %v1152_v41 }
 0x2cd PF: > { %s13_s16 = sadd.s32 1, %s2755_s16   ;;  %s4041_s12 = smov %s2747_s14 }
 0x2ce   : > { %p10_p7 = scmp.ge.s32.totalorder %s13_s16, 6   ;;  %s4042_s13 = smov %s2751_s15 }
 0x2cf   : > { %s4043_s14 = smov %s4046_s17  ;;  %s4044_s15 = smov %s4050_s18 }
 0x2d0   :  { %12 = sbr.rel (!%p10_p7) target bundleno = 3 (0x3), region = 69 }

</bundles_post_ra>
